<compile_context>
chip_gen: v5e
topology: v5e:2x2
jax: 0.10.0
libtpu: 0.0.40
codegen_flags: <defaults>
</compile_context>

<pallas_src>
import functools
import math

import jax
import jax.numpy as jnp
from jax.experimental import pallas as pl
from jax.experimental.pallas import tpu as pltpu

LANES = 128  # TPU lane width; classifier output is padded to this width.


# ----------------------------------------------------------------------------
# Fused Pallas kernel: embeddings-LN -> L transformer layers -> pooler -> head
# ----------------------------------------------------------------------------
def _vmem_spec():
    return pl.BlockSpec(memory_space=pltpu.MemorySpace.VMEM)


def _fused_roberta_kernel(
    x_ref, bias_full_ref, bias_cls_ref, sel_ref,
    emb_g_ref, emb_b_ref,
    wqkv_ref, bqkv_ref, wo_ref, bo_ref, ln1g_ref, ln1b_ref,
    wi_ref, bi_ref, wf_ref, bf_ref, ln2g_ref, ln2b_ref,
    pw_ref, pb_ref, cw_ref, cb_ref,
    o_ref, *, B, S, H, nh, L, eps,
):
    dh = H // nh
    scale = 1.0 / math.sqrt(dh)
    f32, bf16 = jnp.float32, jnp.bfloat16

    def mm(a, w):
        # bf16 MXU matmul (weights pre-cast to bf16 on host), f32 accumulation.
        return jnp.dot(a.astype(bf16), w, preferred_element_type=f32)

    def mm_t(a, b):
        # a @ b.T (contract over last dims), bf16 operands, f32 accumulation.
        return jax.lax.dot_general(a, b, (((1,), (1,)), ((), ())),
                                   preferred_element_type=f32)

    def ln(v, g, b):
        mu = jnp.mean(v, axis=-1, keepdims=True)
        var = jnp.mean(jnp.square(v - mu), axis=-1, keepdims=True)
        return (v - mu) * jax.lax.rsqrt(var + eps) * g + b

    def gelu(v):
        # TODO(synk): HF RoBERTa uses exact erf-GELU; tanh approximation kept
        # to stay on well-supported Mosaic transcendentals.
        c = math.sqrt(2.0 / math.pi)
        return 0.5 * v * (1.0 + jnp.tanh(c * (v + 0.044715 * v * v * v)))

    def attention(q_in, kv_in, bias, wqkv_l, bqkv_l, wo_l, bo_l):
        """Multi-head attention; query rows may be a subset of key/value rows.

        All samples go through ONE set of matmuls per head: the block-diagonal
        additive `bias` (host-precomputed) kills cross-batch and padded-key
        scores, so no per-(batch, head) micro-matmuls and no reshapes.
        """
        if q_in is kv_in:                                     # full layers
            qkv = mm(kv_in, wqkv_l) + bqkv_l                  # (T, 3H) f32
            q, kv = qkv[:, :H], qkv[:, H:]
        else:                                                 # CLS-only queries
            q = mm(q_in, wqkv_l[:, :H]) + bqkv_l[:, :H]       # (M, H)  f32
            kv = mm(kv_in, wqkv_l[:, H:]) + bqkv_l[:, H:]     # (T, 2H) f32
        # Split Q/K/V slabs once per layer; cast to bf16 once (matmul-only use).
        qb = (q * scale).astype(bf16)                         # (M, H)
        kb = kv[:, :H].astype(bf16)                           # (T, H)
        vb = kv[:, H:].astype(bf16)                           # (T, H)
        ctx_heads = []
        for h in range(nh):                                   # nh=4 static unroll
            c0, c1 = h * dh, (h + 1) * dh
            # NOTE: dh(=8) < 128 lane slices are unavoidable at this toy width.
            s = mm_t(qb[:, c0:c1], kb[:, c0:c1]) + bias       # (M, T) f32
            s = s - jnp.max(s, axis=-1, keepdims=True)
            p = jnp.exp(s)
            inv_l = pl.reciprocal(jnp.sum(p, axis=-1, keepdims=True),
                                  approx=True)
            ctx_heads.append(mm(p, vb[:, c0:c1]) * inv_l)     # (M, dh) f32
        # Assemble all heads into one lane-dense slab, then a SINGLE full-K
        # output projection (instead of nh shallow-K folded matmuls).
        ctx = jnp.concatenate(ctx_heads, axis=-1)             # (M, H) f32
        return mm(ctx, wo_l) + bo_l                           # (M, H) f32

    def ffn(v, wi_l, bi_l, wf_l, bf_l, g, b):
        h1 = gelu(mm(v, wi_l) + bi_l)                         # (M, I)
        return ln(mm(h1, wf_l) + bf_l + v, g, b)              # (M, H)

    # Embedding LayerNorm (embedding dropout is the eval-mode identity).
    x = ln(x_ref[...], emb_g_ref[...], emb_b_ref[...])        # (B*S, H) f32
    bias_full = bias_full_ref[...]                            # (B*S, B*S)

    # Full transformer layers 0 .. L-2 (static unroll over small L).
    for l in range(L - 1):
        a = attention(x, x, bias_full, wqkv_ref[l], bqkv_ref[l],
                      wo_ref[l], bo_ref[l])
        x = ln(a + x, ln1g_ref[l], ln1b_ref[l])               # attn dropout = id
        x = ffn(x, wi_ref[l], bi_ref[l], wf_ref[l], bf_ref[l],
                ln2g_ref[l], ln2b_ref[l])                     # ffn dropout = id

    # Last layer: only the CLS token feeds the pooler, so queries / FFN /
    # LayerNorms are restricted to the B CLS rows (keys & values stay full).
    l = L - 1
    cls_in = jnp.dot(sel_ref[...], x, preferred_element_type=f32)  # (B, H) f32
    a = attention(cls_in, x, bias_cls_ref[...], wqkv_ref[l], bqkv_ref[l],
                  wo_ref[l], bo_ref[l])
    xc = ln(a + cls_in, ln1g_ref[l], ln1b_ref[l])
    xc = ffn(xc, wi_ref[l], bi_ref[l], wf_ref[l], bf_ref[l],
             ln2g_ref[l], ln2b_ref[l])

    # Pooler (tanh on CLS) + classifier head.  self.drop(pooled) is identity
    # at inference.  Classifier weights were zero-padded to 128 lanes on host
    # so this final store is lane-dense (no masked partial stores).
    pooled = jnp.tanh(mm(xc, pw_ref[...]) + pb_ref[...])      # (B, H)
    o_ref[...] = (mm(pooled, cw_ref[...]) + cb_ref[...]).astype(o_ref.dtype)


# ----------------------------------------------------------------------------
# Synthetic RoBERTa config / parameters
# ----------------------------------------------------------------------------
CFG = dict(
    vocab=100, hidden=32, heads=4, layers=2, intermediate=64,
    max_pos=40, pad_id=1, n_classes=3, eps=1e-5,
)


def init_params(key, cfg):
    def nrm(k, shape):
        return 0.02 * jax.random.normal(k, shape, jnp.float32)

    keys = iter(jax.random.split(key, 128))
    H, I = cfg["hidden"], cfg["intermediate"]
    p = {
        "word_emb": nrm(next(keys), (cfg["vocab"], H)),
        "pos_emb": nrm(next(keys), (cfg["max_pos"], H)),
        "type_emb": nrm(next(keys), (1, H)),
        "emb_ln_g": jnp.ones((H,), jnp.float32),
        "emb_ln_b": jnp.zeros((H,), jnp.float32),
        "pool_w": nrm(next(keys), (H, H)),
        "pool_b": jnp.zeros((H,), jnp.float32),
        "cls_w": nrm(next(keys), (H, cfg["n_classes"])),
        "cls_b": jnp.zeros((cfg["n_classes"],), jnp.float32),
        "layers": [],
    }
    for _ in range(cfg["layers"]):
        lp = {
            "q_w": nrm(next(keys), (H, H)), "q_b": jnp.zeros((H,), jnp.float32),
            "k_w": nrm(next(keys), (H, H)), "k_b": jnp.zeros((H,), jnp.float32),
            "v_w": nrm(next(keys), (H, H)), "v_b": jnp.zeros((H,), jnp.float32),
            "o_w": nrm(next(keys), (H, H)), "o_b": jnp.zeros((H,), jnp.float32),
            "ln1_g": jnp.ones((H,), jnp.float32), "ln1_b": jnp.zeros((H,), jnp.float32),
            "i_w": nrm(next(keys), (H, I)), "i_b": jnp.zeros((I,), jnp.float32),
            "f_w": nrm(next(keys), (I, H)), "f_b": jnp.zeros((H,), jnp.float32),
            "ln2_g": jnp.ones((H,), jnp.float32), "ln2_b": jnp.zeros((H,), jnp.float32),
        }
        p["layers"].append(lp)
    return p


def fuse_params(params):
    """Stack per-layer weights, fuse Q|K|V, pre-cast matmul weights to bf16,
    and zero-pad the classifier to a lane-dense 128-wide output."""
    bf16 = jnp.bfloat16

    def stack(fn, dtype=None):
        s = jnp.stack([fn(lp) for lp in params["layers"]])
        return s.astype(dtype) if dtype is not None else s

    H = params["pool_w"].shape[0]
    C = params["cls_w"].shape[1]
    cw_pad = jnp.zeros((H, LANES), jnp.float32).at[:, :C].set(params["cls_w"])
    cb_pad = jnp.zeros((1, LANES), jnp.float32).at[:, :C].set(
        params["cls_b"][None, :])

    return {
        "emb_g": params["emb_ln_g"].reshape(1, -1),
        "emb_b": params["emb_ln_b"].reshape(1, -1),
        "wqkv": stack(lambda lp: jnp.concatenate(
            [lp["q_w"], lp["k_w"], lp["v_w"]], axis=1), bf16),   # (L, H, 3H) bf16
        "bqkv": stack(lambda lp: jnp.concatenate(
            [lp["q_b"], lp["k_b"], lp["v_b"]]).reshape(1, -1)),  # (L, 1, 3H) f32
        "wo": stack(lambda lp: lp["o_w"], bf16),
        "bo": stack(lambda lp: lp["o_b"].reshape(1, -1)),
        "ln1g": stack(lambda lp: lp["ln1_g"].reshape(1, -1)),
        "ln1b": stack(lambda lp: lp["ln1_b"].reshape(1, -1)),
        "wi": stack(lambda lp: lp["i_w"], bf16),
        "bi": stack(lambda lp: lp["i_b"].reshape(1, -1)),
        "wf": stack(lambda lp: lp["f_w"], bf16),
        "bf": stack(lambda lp: lp["f_b"].reshape(1, -1)),
        "ln2g": stack(lambda lp: lp["ln2_g"].reshape(1, -1)),
        "ln2b": stack(lambda lp: lp["ln2_b"].reshape(1, -1)),
        "pw": params["pool_w"].astype(bf16),
        "pb": params["pool_b"].reshape(1, -1),
        "cw": cw_pad.astype(bf16),                               # (H, 128) bf16
        "cb": cb_pad,                                            # (1, 128) f32
    }


# ----------------------------------------------------------------------------
# Forward pass: embedding gathers + mask prep in plain JAX glue, rest fused.
# ----------------------------------------------------------------------------
def roberta_sentiment_classifier(params, input_ids, attention_mask, cfg):
    B, S = input_ids.shape
    H, nh, L, C = cfg["hidden"], cfg["heads"], cfg["layers"], cfg["n_classes"]
    T = B * S

    # --- embeddings (table gathers kept in plain JAX glue) ---
    not_pad = (input_ids != cfg["pad_id"]).astype(jnp.int32)
    position_ids = jnp.cumsum(not_pad, axis=1) * not_pad + cfg["pad_id"]
    emb = (params["word_emb"][input_ids]
           + params["pos_emb"][position_ids]
           + params["type_emb"][jnp.zeros_like(input_ids)])
    x_emb = emb.reshape(T, H).astype(jnp.float32)

    # Block-diagonal additive attention bias over the flattened token axis:
    # masks cross-batch pairs and padded keys.  Only keys are masked (HF
    # behaviour); padded query rows never reach the pooler.
    batch_ids = jnp.arange(T, dtype=jnp.int32) // S
    key_ok = attention_mask.reshape(T).astype(bool)
    allow = (batch_ids[:, None] == batch_ids[None, :]) & key_ok[None, :]
    bias_full = jnp.where(allow, 0.0, -1e9).astype(jnp.float32)   # (T, T)

    cls_rows = jnp.arange(B, dtype=jnp.int32) * S
    bias_cls = bias_full[cls_rows, :]                             # (B, T)
    sel = jax.nn.one_hot(cls_rows, T, dtype=jnp.float32)          # (B, T)

    f = fuse_params(params)
    ins = (x_emb, bias_full, bias_cls, sel,
           f["emb_g"], f["emb_b"],
           f["wqkv"], f["bqkv"], f["wo"], f["bo"], f["ln1g"], f["ln1b"],
           f["wi"], f["bi"], f["wf"], f["bf"], f["ln2g"], f["ln2b"],
           f["pw"], f["pb"], f["cw"], f["cb"])

    kernel = functools.partial(
        _fused_roberta_kernel, B=B, S=S, H=H, nh=nh, L=L, eps=cfg["eps"])

    logits_pad = pl.pallas_call(
        kernel,
        out_shape=jax.ShapeDtypeStruct((B, LANES), jnp.float32),
        in_specs=[_vmem_spec()] * len(ins),
        out_specs=_vmem_spec(),
    )(*ins)
    return logits_pad[:, :C]


# ----------------------------------------------------------------------------
if __name__ == "__main__":
    B, S = 2, 8
    key = jax.random.PRNGKey(0)
    k_ids, k_params = jax.random.split(key)

    input_ids = jax.random.randint(k_ids, (B, S), 2, CFG["vocab"], dtype=jnp.int32)
    input_ids = input_ids.at[:, 0].set(0)                    # <s> token
    input_ids = input_ids.at[1, 6:].set(CFG["pad_id"])       # pad tail of sample 1
    attention_mask = (input_ids != CFG["pad_id"]).astype(jnp.int32)

    params = init_params(k_params, CFG)

    logits = roberta_sentiment_classifier(params, input_ids, attention_mask, CFG)
    logits = jax.block_until_ready(logits)
    assert logits.shape == (B, CFG["n_classes"]) and logits.dtype == jnp.float32
    assert bool(jnp.all(jnp.isfinite(logits)))
    print("KERNEL_OK")
</pallas_src>

<mosaic_0001>
module attributes {stable_mosaic.version = 11 : i64} {
  func.func @_fused_roberta_kernel(%arg0: memref<16x32xf32, #tpu.memory_space<vmem>>, %arg1: memref<16x16xf32, #tpu.memory_space<vmem>>, %arg2: memref<2x16xf32, #tpu.memory_space<vmem>>, %arg3: memref<2x16xf32, #tpu.memory_space<vmem>>, %arg4: memref<1x32xf32, #tpu.memory_space<vmem>>, %arg5: memref<1x32xf32, #tpu.memory_space<vmem>>, %arg6: memref<2x32x96xbf16, #tpu.memory_space<vmem>>, %arg7: memref<2x1x96xf32, #tpu.memory_space<vmem>>, %arg8: memref<2x32x32xbf16, #tpu.memory_space<vmem>>, %arg9: memref<2x1x32xf32, #tpu.memory_space<vmem>>, %arg10: memref<2x1x32xf32, #tpu.memory_space<vmem>>, %arg11: memref<2x1x32xf32, #tpu.memory_space<vmem>>, %arg12: memref<2x32x64xbf16, #tpu.memory_space<vmem>>, %arg13: memref<2x1x64xf32, #tpu.memory_space<vmem>>, %arg14: memref<2x64x32xbf16, #tpu.memory_space<vmem>>, %arg15: memref<2x1x32xf32, #tpu.memory_space<vmem>>, %arg16: memref<2x1x32xf32, #tpu.memory_space<vmem>>, %arg17: memref<2x1x32xf32, #tpu.memory_space<vmem>>, %arg18: memref<32x32xbf16, #tpu.memory_space<vmem>>, %arg19: memref<1x32xf32, #tpu.memory_space<vmem>>, %arg20: memref<32x128xbf16, #tpu.memory_space<vmem>>, %arg21: memref<1x128xf32, #tpu.memory_space<vmem>>, %arg22: memref<2x128xf32, #tpu.memory_space<vmem>>) attributes {dimension_semantics = [], scalar_prefetch = 0 : i64, scratch_operands = 0 : i64, tpu.core_type = #tpu.core_type<tc>} {
    %c0 = arith.constant 0 : index
    %c0_0 = arith.constant 0 : index
    %0 = vector.load %arg0[%c0, %c0_0] : memref<16x32xf32, #tpu.memory_space<vmem>>, vector<16x32xf32>
    %c0_1 = arith.constant 0 : index
    %c0_2 = arith.constant 0 : index
    %1 = vector.load %arg4[%c0_1, %c0_2] : memref<1x32xf32, #tpu.memory_space<vmem>>, vector<1x32xf32>
    %c0_3 = arith.constant 0 : index
    %c0_4 = arith.constant 0 : index
    %2 = vector.load %arg5[%c0_3, %c0_4] : memref<1x32xf32, #tpu.memory_space<vmem>>, vector<1x32xf32>
    %cst = arith.constant dense<0.000000e+00> : vector<16xf32>
    %3 = vector.multi_reduction <add>, %0, %cst [1] : vector<16x32xf32> to vector<16xf32>
    %4 = vector.shape_cast %3 : vector<16xf32> to vector<16x1xf32>
    %cst_5 = arith.constant 3.200000e+01 : f32
    %5 = vector.broadcast %cst_5 : f32 to vector<16x1xf32>
    %6 = arith.divf %4, %5 : vector<16x1xf32>
    %7 = vector.broadcast %6 : vector<16x1xf32> to vector<16x32xf32>
    %8 = arith.subf %0, %7 : vector<16x32xf32>
    %9 = arith.mulf %8, %8 : vector<16x32xf32>
    %cst_6 = arith.constant dense<0.000000e+00> : vector<16xf32>
    %10 = vector.multi_reduction <add>, %9, %cst_6 [1] : vector<16x32xf32> to vector<16xf32>
    %11 = vector.shape_cast %10 : vector<16xf32> to vector<16x1xf32>
    %cst_7 = arith.constant 3.200000e+01 : f32
    %12 = vector.broadcast %cst_7 : f32 to vector<16x1xf32>
    %13 = arith.divf %11, %12 : vector<16x1xf32>
    %14 = vector.broadcast %6 : vector<16x1xf32> to vector<16x32xf32>
    %15 = arith.subf %0, %14 : vector<16x32xf32>
    %cst_8 = arith.constant 9.99999974E-6 : f32
    %16 = vector.broadcast %cst_8 : f32 to vector<16x1xf32>
    %17 = arith.addf %13, %16 : vector<16x1xf32>
    %18 = math.rsqrt %17 : vector<16x1xf32>
    %19 = vector.broadcast %18 : vector<16x1xf32> to vector<16x32xf32>
    %20 = arith.mulf %15, %19 : vector<16x32xf32>
    %21 = vector.broadcast %1 : vector<1x32xf32> to vector<16x32xf32>
    %22 = arith.mulf %20, %21 : vector<16x32xf32>
    %23 = vector.broadcast %2 : vector<1x32xf32> to vector<16x32xf32>
    %24 = arith.addf %22, %23 : vector<16x32xf32>
    %c0_9 = arith.constant 0 : index
    %c0_10 = arith.constant 0 : index
    %25 = vector.load %arg1[%c0_9, %c0_10] : memref<16x16xf32, #tpu.memory_space<vmem>>, vector<16x16xf32>
    %c0_11 = arith.constant 0 : index
    %c0_12 = arith.constant 0 : index
    %c0_13 = arith.constant 0 : index
    %26 = vector.load %arg6[%c0_11, %c0_12, %c0_13] : memref<2x32x96xbf16, #tpu.memory_space<vmem>>, vector<1x32x96xbf16>
    %27 = vector.shape_cast %26 : vector<1x32x96xbf16> to vector<32x96xbf16>
    %c0_14 = arith.constant 0 : index
    %c0_15 = arith.constant 0 : index
    %c0_16 = arith.constant 0 : index
    %28 = vector.load %arg7[%c0_14, %c0_15, %c0_16] : memref<2x1x96xf32, #tpu.memory_space<vmem>>, vector<1x1x96xf32>
    %29 = vector.shape_cast %28 : vector<1x1x96xf32> to vector<1x96xf32>
    %c0_17 = arith.constant 0 : index
    %c0_18 = arith.constant 0 : index
    %c0_19 = arith.constant 0 : index
    %30 = vector.load %arg8[%c0_17, %c0_18, %c0_19] : memref<2x32x32xbf16, #tpu.memory_space<vmem>>, vector<1x32x32xbf16>
    %31 = vector.shape_cast %30 : vector<1x32x32xbf16> to vector<32x32xbf16>
    %c0_20 = arith.constant 0 : index
    %c0_21 = arith.constant 0 : index
    %c0_22 = arith.constant 0 : index
    %32 = vector.load %arg9[%c0_20, %c0_21, %c0_22] : memref<2x1x32xf32, #tpu.memory_space<vmem>>, vector<1x1x32xf32>
    %33 = vector.shape_cast %32 : vector<1x1x32xf32> to vector<1x32xf32>
    %34 = arith.truncf %24 : vector<16x32xf32> to vector<16x32xbf16>
    %cst_23 = arith.constant dense<0.000000e+00> : vector<16x96xf32>
    %35 = tpu.matmul %34, %27, %cst_23 {dimension_numbers = #tpu.dot_dimension_numbers<[1], [0], [0], [1], [0, 0, 1, 1], [], []>} : vector<16x32xbf16>, vector<32x96xbf16>, vector<16x96xf32> -> vector<16x96xf32>
    %36 = vector.broadcast %29 : vector<1x96xf32> to vector<16x96xf32>
    %37 = arith.addf %35, %36 : vector<16x96xf32>
    %38 = vector.extract_strided_slice %37 {offsets = [0, 0], sizes = [16, 32], strides = [1, 1]} : vector<16x96xf32> to vector<16x32xf32>
    %39 = vector.extract_strided_slice %37 {offsets = [0, 32], sizes = [16, 64], strides = [1, 1]} : vector<16x96xf32> to vector<16x64xf32>
    %cst_24 = arith.constant 0.353553385 : f32
    %40 = vector.broadcast %cst_24 : f32 to vector<16x32xf32>
    %41 = arith.mulf %38, %40 : vector<16x32xf32>
    %42 = arith.truncf %41 : vector<16x32xf32> to vector<16x32xbf16>
    %43 = vector.extract_strided_slice %39 {offsets = [0, 0], sizes = [16, 32], strides = [1, 1]} : vector<16x64xf32> to vector<16x32xf32>
    %44 = arith.truncf %43 : vector<16x32xf32> to vector<16x32xbf16>
    %45 = vector.extract_strided_slice %39 {offsets = [0, 32], sizes = [16, 32], strides = [1, 1]} : vector<16x64xf32> to vector<16x32xf32>
    %46 = arith.truncf %45 : vector<16x32xf32> to vector<16x32xbf16>
    %47 = vector.extract_strided_slice %42 {offsets = [0, 0], sizes = [16, 8], strides = [1, 1]} : vector<16x32xbf16> to vector<16x8xbf16>
    %48 = vector.extract_strided_slice %44 {offsets = [0, 0], sizes = [16, 8], strides = [1, 1]} : vector<16x32xbf16> to vector<16x8xbf16>
    %cst_25 = arith.constant dense<0.000000e+00> : vector<16x16xf32>
    %49 = tpu.matmul %47, %48, %cst_25 {dimension_numbers = #tpu.dot_dimension_numbers<[1], [1], [0], [0], [0, 0, 1, 0], [], []>} : vector<16x8xbf16>, vector<16x8xbf16>, vector<16x16xf32> -> vector<16x16xf32>
    %50 = arith.addf %49, %25 : vector<16x16xf32>
    %cst_26 = arith.constant dense<0xFF800000> : vector<16xf32>
    %51 = vector.multi_reduction <maximumf>, %50, %cst_26 [1] : vector<16x16xf32> to vector<16xf32>
    %52 = vector.shape_cast %51 : vector<16xf32> to vector<16x1xf32>
    %53 = vector.broadcast %52 : vector<16x1xf32> to vector<16x16xf32>
    %54 = arith.subf %50, %53 : vector<16x16xf32>
    %55 = math.exp %54 : vector<16x16xf32>
    %cst_27 = arith.constant dense<0.000000e+00> : vector<16xf32>
    %56 = vector.multi_reduction <add>, %55, %cst_27 [1] : vector<16x16xf32> to vector<16xf32>
    %57 = vector.shape_cast %56 : vector<16xf32> to vector<16x1xf32>
    %58 = tpu.reciprocal %57 {approx = true} : vector<16x1xf32> -> vector<16x1xf32>
    %59 = vector.extract_strided_slice %46 {offsets = [0, 0], sizes = [16, 8], strides = [1, 1]} : vector<16x32xbf16> to vector<16x8xbf16>
    %60 = arith.truncf %55 : vector<16x16xf32> to vector<16x16xbf16>
    %cst_28 = arith.constant dense<0.000000e+00> : vector<16x8xf32>
    %61 = tpu.matmul %60, %59, %cst_28 {dimension_numbers = #tpu.dot_dimension_numbers<[1], [0], [0], [1], [0, 0, 1, 1], [], []>} : vector<16x16xbf16>, vector<16x8xbf16>, vector<16x8xf32> -> vector<16x8xf32>
    %62 = vector.broadcast %58 : vector<16x1xf32> to vector<16x8xf32>
    %63 = arith.mulf %61, %62 : vector<16x8xf32>
    %64 = vector.extract_strided_slice %42 {offsets = [0, 8], sizes = [16, 8], strides = [1, 1]} : vector<16x32xbf16> to vector<16x8xbf16>
    %65 = vector.extract_strided_slice %44 {offsets = [0, 8], sizes = [16, 8], strides = [1, 1]} : vector<16x32xbf16> to vector<16x8xbf16>
    %cst_29 = arith.constant dense<0.000000e+00> : vector<16x16xf32>
    %66 = tpu.matmul %64, %65, %cst_29 {dimension_numbers = #tpu.dot_dimension_numbers<[1], [1], [0], [0], [0, 0, 1, 0], [], []>} : vector<16x8xbf16>, vector<16x8xbf16>, vector<16x16xf32> -> vector<16x16xf32>
    %67 = arith.addf %66, %25 : vector<16x16xf32>
    %cst_30 = arith.constant dense<0xFF800000> : vector<16xf32>
    %68 = vector.multi_reduction <maximumf>, %67, %cst_30 [1] : vector<16x16xf32> to vector<16xf32>
    %69 = vector.shape_cast %68 : vector<16xf32> to vector<16x1xf32>
    %70 = vector.broadcast %69 : vector<16x1xf32> to vector<16x16xf32>
    %71 = arith.subf %67, %70 : vector<16x16xf32>
    %72 = math.exp %71 : vector<16x16xf32>
    %cst_31 = arith.constant dense<0.000000e+00> : vector<16xf32>
    %73 = vector.multi_reduction <add>, %72, %cst_31 [1] : vector<16x16xf32> to vector<16xf32>
    %74 = vector.shape_cast %73 : vector<16xf32> to vector<16x1xf32>
    %75 = tpu.reciprocal %74 {approx = true} : vector<16x1xf32> -> vector<16x1xf32>
    %76 = vector.extract_strided_slice %46 {offsets = [0, 8], sizes = [16, 8], strides = [1, 1]} : vector<16x32xbf16> to vector<16x8xbf16>
    %77 = arith.truncf %72 : vector<16x16xf32> to vector<16x16xbf16>
    %cst_32 = arith.constant dense<0.000000e+00> : vector<16x8xf32>
    %78 = tpu.matmul %77, %76, %cst_32 {dimension_numbers = #tpu.dot_dimension_numbers<[1], [0], [0], [1], [0, 0, 1, 1], [], []>} : vector<16x16xbf16>, vector<16x8xbf16>, vector<16x8xf32> -> vector<16x8xf32>
    %79 = vector.broadcast %75 : vector<16x1xf32> to vector<16x8xf32>
    %80 = arith.mulf %78, %79 : vector<16x8xf32>
    %81 = vector.extract_strided_slice %42 {offsets = [0, 16], sizes = [16, 8], strides = [1, 1]} : vector<16x32xbf16> to vector<16x8xbf16>
    %82 = vector.extract_strided_slice %44 {offsets = [0, 16], sizes = [16, 8], strides = [1, 1]} : vector<16x32xbf16> to vector<16x8xbf16>
    %cst_33 = arith.constant dense<0.000000e+00> : vector<16x16xf32>
    %83 = tpu.matmul %81, %82, %cst_33 {dimension_numbers = #tpu.dot_dimension_numbers<[1], [1], [0], [0], [0, 0, 1, 0], [], []>} : vector<16x8xbf16>, vector<16x8xbf16>, vector<16x16xf32> -> vector<16x16xf32>
    %84 = arith.addf %83, %25 : vector<16x16xf32>
    %cst_34 = arith.constant dense<0xFF800000> : vector<16xf32>
    %85 = vector.multi_reduction <maximumf>, %84, %cst_34 [1] : vector<16x16xf32> to vector<16xf32>
    %86 = vector.shape_cast %85 : vector<16xf32> to vector<16x1xf32>
    %87 = vector.broadcast %86 : vector<16x1xf32> to vector<16x16xf32>
    %88 = arith.subf %84, %87 : vector<16x16xf32>
    %89 = math.exp %88 : vector<16x16xf32>
    %cst_35 = arith.constant dense<0.000000e+00> : vector<16xf32>
    %90 = vector.multi_reduction <add>, %89, %cst_35 [1] : vector<16x16xf32> to vector<16xf32>
    %91 = vector.shape_cast %90 : vector<16xf32> to vector<16x1xf32>
    %92 = tpu.reciprocal %91 {approx = true} : vector<16x1xf32> -> vector<16x1xf32>
    %93 = vector.extract_strided_slice %46 {offsets = [0, 16], sizes = [16, 8], strides = [1, 1]} : vector<16x32xbf16> to vector<16x8xbf16>
    %94 = arith.truncf %89 : vector<16x16xf32> to vector<16x16xbf16>
    %cst_36 = arith.constant dense<0.000000e+00> : vector<16x8xf32>
    %95 = tpu.matmul %94, %93, %cst_36 {dimension_numbers = #tpu.dot_dimension_numbers<[1], [0], [0], [1], [0, 0, 1, 1], [], []>} : vector<16x16xbf16>, vector<16x8xbf16>, vector<16x8xf32> -> vector<16x8xf32>
    %96 = vector.broadcast %92 : vector<16x1xf32> to vector<16x8xf32>
    %97 = arith.mulf %95, %96 : vector<16x8xf32>
    %98 = vector.extract_strided_slice %42 {offsets = [0, 24], sizes = [16, 8], strides = [1, 1]} : vector<16x32xbf16> to vector<16x8xbf16>
    %99 = vector.extract_strided_slice %44 {offsets = [0, 24], sizes = [16, 8], strides = [1, 1]} : vector<16x32xbf16> to vector<16x8xbf16>
    %cst_37 = arith.constant dense<0.000000e+00> : vector<16x16xf32>
    %100 = tpu.matmul %98, %99, %cst_37 {dimension_numbers = #tpu.dot_dimension_numbers<[1], [1], [0], [0], [0, 0, 1, 0], [], []>} : vector<16x8xbf16>, vector<16x8xbf16>, vector<16x16xf32> -> vector<16x16xf32>
    %101 = arith.addf %100, %25 : vector<16x16xf32>
    %cst_38 = arith.constant dense<0xFF800000> : vector<16xf32>
    %102 = vector.multi_reduction <maximumf>, %101, %cst_38 [1] : vector<16x16xf32> to vector<16xf32>
    %103 = vector.shape_cast %102 : vector<16xf32> to vector<16x1xf32>
    %104 = vector.broadcast %103 : vector<16x1xf32> to vector<16x16xf32>
    %105 = arith.subf %101, %104 : vector<16x16xf32>
    %106 = math.exp %105 : vector<16x16xf32>
    %cst_39 = arith.constant dense<0.000000e+00> : vector<16xf32>
    %107 = vector.multi_reduction <add>, %106, %cst_39 [1] : vector<16x16xf32> to vector<16xf32>
    %108 = vector.shape_cast %107 : vector<16xf32> to vector<16x1xf32>
    %109 = tpu.reciprocal %108 {approx = true} : vector<16x1xf32> -> vector<16x1xf32>
    %110 = vector.extract_strided_slice %46 {offsets = [0, 24], sizes = [16, 8], strides = [1, 1]} : vector<16x32xbf16> to vector<16x8xbf16>
    %111 = arith.truncf %106 : vector<16x16xf32> to vector<16x16xbf16>
    %cst_40 = arith.constant dense<0.000000e+00> : vector<16x8xf32>
    %112 = tpu.matmul %111, %110, %cst_40 {dimension_numbers = #tpu.dot_dimension_numbers<[1], [0], [0], [1], [0, 0, 1, 1], [], []>} : vector<16x16xbf16>, vector<16x8xbf16>, vector<16x8xf32> -> vector<16x8xf32>
    %113 = vector.broadcast %109 : vector<16x1xf32> to vector<16x8xf32>
    %114 = arith.mulf %112, %113 : vector<16x8xf32>
    %115 = tpu.concatenate %63, %80, %97, %114 in 1 : vector<16x8xf32>, vector<16x8xf32>, vector<16x8xf32>, vector<16x8xf32> -> vector<16x32xf32>
    %116 = arith.truncf %115 : vector<16x32xf32> to vector<16x32xbf16>
    %cst_41 = arith.constant dense<0.000000e+00> : vector<16x32xf32>
    %117 = tpu.matmul %116, %31, %cst_41 {dimension_numbers = #tpu.dot_dimension_numbers<[1], [0], [0], [1], [0, 0, 1, 1], [], []>} : vector<16x32xbf16>, vector<32x32xbf16>, vector<16x32xf32> -> vector<16x32xf32>
    %118 = vector.broadcast %33 : vector<1x32xf32> to vector<16x32xf32>
    %119 = arith.addf %117, %118 : vector<16x32xf32>
    %120 = arith.addf %119, %24 : vector<16x32xf32>
    %c0_42 = arith.constant 0 : index
    %c0_43 = arith.constant 0 : index
    %c0_44 = arith.constant 0 : index
    %121 = vector.load %arg10[%c0_42, %c0_43, %c0_44] : memref<2x1x32xf32, #tpu.memory_space<vmem>>, vector<1x1x32xf32>
    %122 = vector.shape_cast %121 : vector<1x1x32xf32> to vector<1x32xf32>
    %c0_45 = arith.constant 0 : index
    %c0_46 = arith.constant 0 : index
    %c0_47 = arith.constant 0 : index
    %123 = vector.load %arg11[%c0_45, %c0_46, %c0_47] : memref<2x1x32xf32, #tpu.memory_space<vmem>>, vector<1x1x32xf32>
    %124 = vector.shape_cast %123 : vector<1x1x32xf32> to vector<1x32xf32>
    %cst_48 = arith.constant dense<0.000000e+00> : vector<16xf32>
    %125 = vector.multi_reduction <add>, %120, %cst_48 [1] : vector<16x32xf32> to vector<16xf32>
    %126 = vector.shape_cast %125 : vector<16xf32> to vector<16x1xf32>
    %cst_49 = arith.constant 3.200000e+01 : f32
    %127 = vector.broadcast %cst_49 : f32 to vector<16x1xf32>
    %128 = arith.divf %126, %127 : vector<16x1xf32>
    %129 = vector.broadcast %128 : vector<16x1xf32> to vector<16x32xf32>
    %130 = arith.subf %120, %129 : vector<16x32xf32>
    %131 = arith.mulf %130, %130 : vector<16x32xf32>
    %cst_50 = arith.constant dense<0.000000e+00> : vector<16xf32>
    %132 = vector.multi_reduction <add>, %131, %cst_50 [1] : vector<16x32xf32> to vector<16xf32>
    %133 = vector.shape_cast %132 : vector<16xf32> to vector<16x1xf32>
    %cst_51 = arith.constant 3.200000e+01 : f32
    %134 = vector.broadcast %cst_51 : f32 to vector<16x1xf32>
    %135 = arith.divf %133, %134 : vector<16x1xf32>
    %136 = vector.broadcast %128 : vector<16x1xf32> to vector<16x32xf32>
    %137 = arith.subf %120, %136 : vector<16x32xf32>
    %cst_52 = arith.constant 9.99999974E-6 : f32
    %138 = vector.broadcast %cst_52 : f32 to vector<16x1xf32>
    %139 = arith.addf %135, %138 : vector<16x1xf32>
    %140 = math.rsqrt %139 : vector<16x1xf32>
    %141 = vector.broadcast %140 : vector<16x1xf32> to vector<16x32xf32>
    %142 = arith.mulf %137, %141 : vector<16x32xf32>
    %143 = vector.broadcast %122 : vector<1x32xf32> to vector<16x32xf32>
    %144 = arith.mulf %142, %143 : vector<16x32xf32>
    %145 = vector.broadcast %124 : vector<1x32xf32> to vector<16x32xf32>
    %146 = arith.addf %144, %145 : vector<16x32xf32>
    %c0_53 = arith.constant 0 : index
    %c0_54 = arith.constant 0 : index
    %c0_55 = arith.constant 0 : index
    %147 = vector.load %arg12[%c0_53, %c0_54, %c0_55] : memref<2x32x64xbf16, #tpu.memory_space<vmem>>, vector<1x32x64xbf16>
    %148 = vector.shape_cast %147 : vector<1x32x64xbf16> to vector<32x64xbf16>
    %c0_56 = arith.constant 0 : index
    %c0_57 = arith.constant 0 : index
    %c0_58 = arith.constant 0 : index
    %149 = vector.load %arg13[%c0_56, %c0_57, %c0_58] : memref<2x1x64xf32, #tpu.memory_space<vmem>>, vector<1x1x64xf32>
    %150 = vector.shape_cast %149 : vector<1x1x64xf32> to vector<1x64xf32>
    %c0_59 = arith.constant 0 : index
    %c0_60 = arith.constant 0 : index
    %c0_61 = arith.constant 0 : index
    %151 = vector.load %arg14[%c0_59, %c0_60, %c0_61] : memref<2x64x32xbf16, #tpu.memory_space<vmem>>, vector<1x64x32xbf16>
    %152 = vector.shape_cast %151 : vector<1x64x32xbf16> to vector<64x32xbf16>
    %c0_62 = arith.constant 0 : index
    %c0_63 = arith.constant 0 : index
    %c0_64 = arith.constant 0 : index
    %153 = vector.load %arg15[%c0_62, %c0_63, %c0_64] : memref<2x1x32xf32, #tpu.memory_space<vmem>>, vector<1x1x32xf32>
    %154 = vector.shape_cast %153 : vector<1x1x32xf32> to vector<1x32xf32>
    %c0_65 = arith.constant 0 : index
    %c0_66 = arith.constant 0 : index
    %c0_67 = arith.constant 0 : index
    %155 = vector.load %arg16[%c0_65, %c0_66, %c0_67] : memref<2x1x32xf32, #tpu.memory_space<vmem>>, vector<1x1x32xf32>
    %156 = vector.shape_cast %155 : vector<1x1x32xf32> to vector<1x32xf32>
    %c0_68 = arith.constant 0 : index
    %c0_69 = arith.constant 0 : index
    %c0_70 = arith.constant 0 : index
    %157 = vector.load %arg17[%c0_68, %c0_69, %c0_70] : memref<2x1x32xf32, #tpu.memory_space<vmem>>, vector<1x1x32xf32>
    %158 = vector.shape_cast %157 : vector<1x1x32xf32> to vector<1x32xf32>
    %159 = arith.truncf %146 : vector<16x32xf32> to vector<16x32xbf16>
    %cst_71 = arith.constant dense<0.000000e+00> : vector<16x64xf32>
    %160 = tpu.matmul %159, %148, %cst_71 {dimension_numbers = #tpu.dot_dimension_numbers<[1], [0], [0], [1], [0, 0, 1, 1], [], []>} : vector<16x32xbf16>, vector<32x64xbf16>, vector<16x64xf32> -> vector<16x64xf32>
    %161 = vector.broadcast %150 : vector<1x64xf32> to vector<16x64xf32>
    %162 = arith.addf %160, %161 : vector<16x64xf32>
    %cst_72 = arith.constant 5.000000e-01 : f32
    %163 = vector.broadcast %cst_72 : f32 to vector<16x64xf32>
    %164 = arith.mulf %163, %162 : vector<16x64xf32>
    %cst_73 = arith.constant 4.471500e-02 : f32
    %165 = vector.broadcast %cst_73 : f32 to vector<16x64xf32>
    %166 = arith.mulf %165, %162 : vector<16x64xf32>
    %167 = arith.mulf %166, %162 : vector<16x64xf32>
    %168 = arith.mulf %167, %162 : vector<16x64xf32>
    %169 = arith.addf %162, %168 : vector<16x64xf32>
    %cst_74 = arith.constant 0.797884583 : f32
    %170 = vector.broadcast %cst_74 : f32 to vector<16x64xf32>
    %171 = arith.mulf %170, %169 : vector<16x64xf32>
    %172 = math.tanh %171 : vector<16x64xf32>
    %cst_75 = arith.constant 1.000000e+00 : f32
    %173 = vector.broadcast %cst_75 : f32 to vector<16x64xf32>
    %174 = arith.addf %173, %172 : vector<16x64xf32>
    %175 = arith.mulf %164, %174 : vector<16x64xf32>
    %176 = arith.truncf %175 : vector<16x64xf32> to vector<16x64xbf16>
    %cst_76 = arith.constant dense<0.000000e+00> : vector<16x32xf32>
    %177 = tpu.matmul %176, %152, %cst_76 {dimension_numbers = #tpu.dot_dimension_numbers<[1], [0], [0], [1], [0, 0, 1, 1], [], []>} : vector<16x64xbf16>, vector<64x32xbf16>, vector<16x32xf32> -> vector<16x32xf32>
    %178 = vector.broadcast %154 : vector<1x32xf32> to vector<16x32xf32>
    %179 = arith.addf %177, %178 : vector<16x32xf32>
    %180 = arith.addf %179, %146 : vector<16x32xf32>
    %cst_77 = arith.constant dense<0.000000e+00> : vector<16xf32>
    %181 = vector.multi_reduction <add>, %180, %cst_77 [1] : vector<16x32xf32> to vector<16xf32>
    %182 = vector.shape_cast %181 : vector<16xf32> to vector<16x1xf32>
    %cst_78 = arith.constant 3.200000e+01 : f32
    %183 = vector.broadcast %cst_78 : f32 to vector<16x1xf32>
    %184 = arith.divf %182, %183 : vector<16x1xf32>
    %185 = vector.broadcast %184 : vector<16x1xf32> to vector<16x32xf32>
    %186 = arith.subf %180, %185 : vector<16x32xf32>
    %187 = arith.mulf %186, %186 : vector<16x32xf32>
    %cst_79 = arith.constant dense<0.000000e+00> : vector<16xf32>
    %188 = vector.multi_reduction <add>, %187, %cst_79 [1] : vector<16x32xf32> to vector<16xf32>
    %189 = vector.shape_cast %188 : vector<16xf32> to vector<16x1xf32>
    %cst_80 = arith.constant 3.200000e+01 : f32
    %190 = vector.broadcast %cst_80 : f32 to vector<16x1xf32>
    %191 = arith.divf %189, %190 : vector<16x1xf32>
    %192 = vector.broadcast %184 : vector<16x1xf32> to vector<16x32xf32>
    %193 = arith.subf %180, %192 : vector<16x32xf32>
    %cst_81 = arith.constant 9.99999974E-6 : f32
    %194 = vector.broadcast %cst_81 : f32 to vector<16x1xf32>
    %195 = arith.addf %191, %194 : vector<16x1xf32>
    %196 = math.rsqrt %195 : vector<16x1xf32>
    %197 = vector.broadcast %196 : vector<16x1xf32> to vector<16x32xf32>
    %198 = arith.mulf %193, %197 : vector<16x32xf32>
    %199 = vector.broadcast %156 : vector<1x32xf32> to vector<16x32xf32>
    %200 = arith.mulf %198, %199 : vector<16x32xf32>
    %201 = vector.broadcast %158 : vector<1x32xf32> to vector<16x32xf32>
    %202 = arith.addf %200, %201 : vector<16x32xf32>
    %c0_82 = arith.constant 0 : index
    %c0_83 = arith.constant 0 : index
    %203 = vector.load %arg3[%c0_82, %c0_83] : memref<2x16xf32, #tpu.memory_space<vmem>>, vector<2x16xf32>
    %cst_84 = arith.constant dense<0.000000e+00> : vector<2x32xf32>
    %204 = tpu.matmul %203, %202, %cst_84 {dimension_numbers = #tpu.dot_dimension_numbers<[1], [0], [0], [1], [0, 0, 1, 1], [], []>} : vector<2x16xf32>, vector<16x32xf32>, vector<2x32xf32> -> vector<2x32xf32>
    %c0_85 = arith.constant 0 : index
    %c0_86 = arith.constant 0 : index
    %205 = vector.load %arg2[%c0_85, %c0_86] : memref<2x16xf32, #tpu.memory_space<vmem>>, vector<2x16xf32>
    %c1 = arith.constant 1 : index
    %c0_87 = arith.constant 0 : index
    %c0_88 = arith.constant 0 : index
    %206 = vector.load %arg6[%c1, %c0_87, %c0_88] : memref<2x32x96xbf16, #tpu.memory_space<vmem>>, vector<1x32x96xbf16>
    %207 = vector.shape_cast %206 : vector<1x32x96xbf16> to vector<32x96xbf16>
    %c1_89 = arith.constant 1 : index
    %c0_90 = arith.constant 0 : index
    %c0_91 = arith.constant 0 : index
    %208 = vector.load %arg7[%c1_89, %c0_90, %c0_91] : memref<2x1x96xf32, #tpu.memory_space<vmem>>, vector<1x1x96xf32>
    %209 = vector.shape_cast %208 : vector<1x1x96xf32> to vector<1x96xf32>
    %c1_92 = arith.constant 1 : index
    %c0_93 = arith.constant 0 : index
    %c0_94 = arith.constant 0 : index
    %210 = vector.load %arg8[%c1_92, %c0_93, %c0_94] : memref<2x32x32xbf16, #tpu.memory_space<vmem>>, vector<1x32x32xbf16>
    %211 = vector.shape_cast %210 : vector<1x32x32xbf16> to vector<32x32xbf16>
    %c1_95 = arith.constant 1 : index
    %c0_96 = arith.constant 0 : index
    %c0_97 = arith.constant 0 : index
    %212 = vector.load %arg9[%c1_95, %c0_96, %c0_97] : memref<2x1x32xf32, #tpu.memory_space<vmem>>, vector<1x1x32xf32>
    %213 = vector.shape_cast %212 : vector<1x1x32xf32> to vector<1x32xf32>
    %214 = vector.extract_strided_slice %207 {offsets = [0, 0], sizes = [32, 32], strides = [1, 1]} : vector<32x96xbf16> to vector<32x32xbf16>
    %215 = arith.truncf %204 : vector<2x32xf32> to vector<2x32xbf16>
    %cst_98 = arith.constant dense<0.000000e+00> : vector<2x32xf32>
    %216 = tpu.matmul %215, %214, %cst_98 {dimension_numbers = #tpu.dot_dimension_numbers<[1], [0], [0], [1], [0, 0, 1, 1], [], []>} : vector<2x32xbf16>, vector<32x32xbf16>, vector<2x32xf32> -> vector<2x32xf32>
    %217 = vector.extract_strided_slice %209 {offsets = [0, 0], sizes = [1, 32], strides = [1, 1]} : vector<1x96xf32> to vector<1x32xf32>
    %218 = vector.broadcast %217 : vector<1x32xf32> to vector<2x32xf32>
    %219 = arith.addf %216, %218 : vector<2x32xf32>
    %220 = vector.extract_strided_slice %207 {offsets = [0, 32], sizes = [32, 64], strides = [1, 1]} : vector<32x96xbf16> to vector<32x64xbf16>
    %221 = arith.truncf %202 : vector<16x32xf32> to vector<16x32xbf16>
    %cst_99 = arith.constant dense<0.000000e+00> : vector<16x64xf32>
    %222 = tpu.matmul %221, %220, %cst_99 {dimension_numbers = #tpu.dot_dimension_numbers<[1], [0], [0], [1], [0, 0, 1, 1], [], []>} : vector<16x32xbf16>, vector<32x64xbf16>, vector<16x64xf32> -> vector<16x64xf32>
    %223 = vector.extract_strided_slice %209 {offsets = [0, 32], sizes = [1, 64], strides = [1, 1]} : vector<1x96xf32> to vector<1x64xf32>
    %224 = vector.broadcast %223 : vector<1x64xf32> to vector<16x64xf32>
    %225 = arith.addf %222, %224 : vector<16x64xf32>
    %cst_100 = arith.constant 0.353553385 : f32
    %226 = vector.broadcast %cst_100 : f32 to vector<2x32xf32>
    %227 = arith.mulf %219, %226 : vector<2x32xf32>
    %228 = arith.truncf %227 : vector<2x32xf32> to vector<2x32xbf16>
    %229 = vector.extract_strided_slice %225 {offsets = [0, 0], sizes = [16, 32], strides = [1, 1]} : vector<16x64xf32> to vector<16x32xf32>
    %230 = arith.truncf %229 : vector<16x32xf32> to vector<16x32xbf16>
    %231 = vector.extract_strided_slice %225 {offsets = [0, 32], sizes = [16, 32], strides = [1, 1]} : vector<16x64xf32> to vector<16x32xf32>
    %232 = arith.truncf %231 : vector<16x32xf32> to vector<16x32xbf16>
    %233 = vector.extract_strided_slice %228 {offsets = [0, 0], sizes = [2, 8], strides = [1, 1]} : vector<2x32xbf16> to vector<2x8xbf16>
    %234 = vector.extract_strided_slice %230 {offsets = [0, 0], sizes = [16, 8], strides = [1, 1]} : vector<16x32xbf16> to vector<16x8xbf16>
    %cst_101 = arith.constant dense<0.000000e+00> : vector<2x16xf32>
    %235 = tpu.matmul %233, %234, %cst_101 {dimension_numbers = #tpu.dot_dimension_numbers<[1], [1], [0], [0], [0, 0, 1, 0], [], []>} : vector<2x8xbf16>, vector<16x8xbf16>, vector<2x16xf32> -> vector<2x16xf32>
    %236 = arith.addf %235, %205 : vector<2x16xf32>
    %cst_102 = arith.constant dense<0xFF800000> : vector<2xf32>
    %237 = vector.multi_reduction <maximumf>, %236, %cst_102 [1] : vector<2x16xf32> to vector<2xf32>
    %238 = vector.shape_cast %237 : vector<2xf32> to vector<2x1xf32>
    %239 = vector.broadcast %238 : vector<2x1xf32> to vector<2x16xf32>
    %240 = arith.subf %236, %239 : vector<2x16xf32>
    %241 = math.exp %240 : vector<2x16xf32>
    %cst_103 = arith.constant dense<0.000000e+00> : vector<2xf32>
    %242 = vector.multi_reduction <add>, %241, %cst_103 [1] : vector<2x16xf32> to vector<2xf32>
    %243 = vector.shape_cast %242 : vector<2xf32> to vector<2x1xf32>
    %244 = tpu.reciprocal %243 {approx = true} : vector<2x1xf32> -> vector<2x1xf32>
    %245 = vector.extract_strided_slice %232 {offsets = [0, 0], sizes = [16, 8], strides = [1, 1]} : vector<16x32xbf16> to vector<16x8xbf16>
    %246 = arith.truncf %241 : vector<2x16xf32> to vector<2x16xbf16>
    %cst_104 = arith.constant dense<0.000000e+00> : vector<2x8xf32>
    %247 = tpu.matmul %246, %245, %cst_104 {dimension_numbers = #tpu.dot_dimension_numbers<[1], [0], [0], [1], [0, 0, 1, 1], [], []>} : vector<2x16xbf16>, vector<16x8xbf16>, vector<2x8xf32> -> vector<2x8xf32>
    %248 = vector.broadcast %244 : vector<2x1xf32> to vector<2x8xf32>
    %249 = arith.mulf %247, %248 : vector<2x8xf32>
    %250 = vector.extract_strided_slice %228 {offsets = [0, 8], sizes = [2, 8], strides = [1, 1]} : vector<2x32xbf16> to vector<2x8xbf16>
    %251 = vector.extract_strided_slice %230 {offsets = [0, 8], sizes = [16, 8], strides = [1, 1]} : vector<16x32xbf16> to vector<16x8xbf16>
    %cst_105 = arith.constant dense<0.000000e+00> : vector<2x16xf32>
    %252 = tpu.matmul %250, %251, %cst_105 {dimension_numbers = #tpu.dot_dimension_numbers<[1], [1], [0], [0], [0, 0, 1, 0], [], []>} : vector<2x8xbf16>, vector<16x8xbf16>, vector<2x16xf32> -> vector<2x16xf32>
    %253 = arith.addf %252, %205 : vector<2x16xf32>
    %cst_106 = arith.constant dense<0xFF800000> : vector<2xf32>
    %254 = vector.multi_reduction <maximumf>, %253, %cst_106 [1] : vector<2x16xf32> to vector<2xf32>
    %255 = vector.shape_cast %254 : vector<2xf32> to vector<2x1xf32>
    %256 = vector.broadcast %255 : vector<2x1xf32> to vector<2x16xf32>
    %257 = arith.subf %253, %256 : vector<2x16xf32>
    %258 = math.exp %257 : vector<2x16xf32>
    %cst_107 = arith.constant dense<0.000000e+00> : vector<2xf32>
    %259 = vector.multi_reduction <add>, %258, %cst_107 [1] : vector<2x16xf32> to vector<2xf32>
    %260 = vector.shape_cast %259 : vector<2xf32> to vector<2x1xf32>
    %261 = tpu.reciprocal %260 {approx = true} : vector<2x1xf32> -> vector<2x1xf32>
    %262 = vector.extract_strided_slice %232 {offsets = [0, 8], sizes = [16, 8], strides = [1, 1]} : vector<16x32xbf16> to vector<16x8xbf16>
    %263 = arith.truncf %258 : vector<2x16xf32> to vector<2x16xbf16>
    %cst_108 = arith.constant dense<0.000000e+00> : vector<2x8xf32>
    %264 = tpu.matmul %263, %262, %cst_108 {dimension_numbers = #tpu.dot_dimension_numbers<[1], [0], [0], [1], [0, 0, 1, 1], [], []>} : vector<2x16xbf16>, vector<16x8xbf16>, vector<2x8xf32> -> vector<2x8xf32>
    %265 = vector.broadcast %261 : vector<2x1xf32> to vector<2x8xf32>
    %266 = arith.mulf %264, %265 : vector<2x8xf32>
    %267 = vector.extract_strided_slice %228 {offsets = [0, 16], sizes = [2, 8], strides = [1, 1]} : vector<2x32xbf16> to vector<2x8xbf16>
    %268 = vector.extract_strided_slice %230 {offsets = [0, 16], sizes = [16, 8], strides = [1, 1]} : vector<16x32xbf16> to vector<16x8xbf16>
    %cst_109 = arith.constant dense<0.000000e+00> : vector<2x16xf32>
    %269 = tpu.matmul %267, %268, %cst_109 {dimension_numbers = #tpu.dot_dimension_numbers<[1], [1], [0], [0], [0, 0, 1, 0], [], []>} : vector<2x8xbf16>, vector<16x8xbf16>, vector<2x16xf32> -> vector<2x16xf32>
    %270 = arith.addf %269, %205 : vector<2x16xf32>
    %cst_110 = arith.constant dense<0xFF800000> : vector<2xf32>
    %271 = vector.multi_reduction <maximumf>, %270, %cst_110 [1] : vector<2x16xf32> to vector<2xf32>
    %272 = vector.shape_cast %271 : vector<2xf32> to vector<2x1xf32>
    %273 = vector.broadcast %272 : vector<2x1xf32> to vector<2x16xf32>
    %274 = arith.subf %270, %273 : vector<2x16xf32>
    %275 = math.exp %274 : vector<2x16xf32>
    %cst_111 = arith.constant dense<0.000000e+00> : vector<2xf32>
    %276 = vector.multi_reduction <add>, %275, %cst_111 [1] : vector<2x16xf32> to vector<2xf32>
    %277 = vector.shape_cast %276 : vector<2xf32> to vector<2x1xf32>
    %278 = tpu.reciprocal %277 {approx = true} : vector<2x1xf32> -> vector<2x1xf32>
    %279 = vector.extract_strided_slice %232 {offsets = [0, 16], sizes = [16, 8], strides = [1, 1]} : vector<16x32xbf16> to vector<16x8xbf16>
    %280 = arith.truncf %275 : vector<2x16xf32> to vector<2x16xbf16>
    %cst_112 = arith.constant dense<0.000000e+00> : vector<2x8xf32>
    %281 = tpu.matmul %280, %279, %cst_112 {dimension_numbers = #tpu.dot_dimension_numbers<[1], [0], [0], [1], [0, 0, 1, 1], [], []>} : vector<2x16xbf16>, vector<16x8xbf16>, vector<2x8xf32> -> vector<2x8xf32>
    %282 = vector.broadcast %278 : vector<2x1xf32> to vector<2x8xf32>
    %283 = arith.mulf %281, %282 : vector<2x8xf32>
    %284 = vector.extract_strided_slice %228 {offsets = [0, 24], sizes = [2, 8], strides = [1, 1]} : vector<2x32xbf16> to vector<2x8xbf16>
    %285 = vector.extract_strided_slice %230 {offsets = [0, 24], sizes = [16, 8], strides = [1, 1]} : vector<16x32xbf16> to vector<16x8xbf16>
    %cst_113 = arith.constant dense<0.000000e+00> : vector<2x16xf32>
    %286 = tpu.matmul %284, %285, %cst_113 {dimension_numbers = #tpu.dot_dimension_numbers<[1], [1], [0], [0], [0, 0, 1, 0], [], []>} : vector<2x8xbf16>, vector<16x8xbf16>, vector<2x16xf32> -> vector<2x16xf32>
    %287 = arith.addf %286, %205 : vector<2x16xf32>
    %cst_114 = arith.constant dense<0xFF800000> : vector<2xf32>
    %288 = vector.multi_reduction <maximumf>, %287, %cst_114 [1] : vector<2x16xf32> to vector<2xf32>
    %289 = vector.shape_cast %288 : vector<2xf32> to vector<2x1xf32>
    %290 = vector.broadcast %289 : vector<2x1xf32> to vector<2x16xf32>
    %291 = arith.subf %287, %290 : vector<2x16xf32>
    %292 = math.exp %291 : vector<2x16xf32>
    %cst_115 = arith.constant dense<0.000000e+00> : vector<2xf32>
    %293 = vector.multi_reduction <add>, %292, %cst_115 [1] : vector<2x16xf32> to vector<2xf32>
    %294 = vector.shape_cast %293 : vector<2xf32> to vector<2x1xf32>
    %295 = tpu.reciprocal %294 {approx = true} : vector<2x1xf32> -> vector<2x1xf32>
    %296 = vector.extract_strided_slice %232 {offsets = [0, 24], sizes = [16, 8], strides = [1, 1]} : vector<16x32xbf16> to vector<16x8xbf16>
    %297 = arith.truncf %292 : vector<2x16xf32> to vector<2x16xbf16>
    %cst_116 = arith.constant dense<0.000000e+00> : vector<2x8xf32>
    %298 = tpu.matmul %297, %296, %cst_116 {dimension_numbers = #tpu.dot_dimension_numbers<[1], [0], [0], [1], [0, 0, 1, 1], [], []>} : vector<2x16xbf16>, vector<16x8xbf16>, vector<2x8xf32> -> vector<2x8xf32>
    %299 = vector.broadcast %295 : vector<2x1xf32> to vector<2x8xf32>
    %300 = arith.mulf %298, %299 : vector<2x8xf32>
    %301 = tpu.concatenate %249, %266, %283, %300 in 1 : vector<2x8xf32>, vector<2x8xf32>, vector<2x8xf32>, vector<2x8xf32> -> vector<2x32xf32>
    %302 = arith.truncf %301 : vector<2x32xf32> to vector<2x32xbf16>
    %cst_117 = arith.constant dense<0.000000e+00> : vector<2x32xf32>
    %303 = tpu.matmul %302, %211, %cst_117 {dimension_numbers = #tpu.dot_dimension_numbers<[1], [0], [0], [1], [0, 0, 1, 1], [], []>} : vector<2x32xbf16>, vector<32x32xbf16>, vector<2x32xf32> -> vector<2x32xf32>
    %304 = vector.broadcast %213 : vector<1x32xf32> to vector<2x32xf32>
    %305 = arith.addf %303, %304 : vector<2x32xf32>
    %306 = arith.addf %305, %204 : vector<2x32xf32>
    %c1_118 = arith.constant 1 : index
    %c0_119 = arith.constant 0 : index
    %c0_120 = arith.constant 0 : index
    %307 = vector.load %arg10[%c1_118, %c0_119, %c0_120] : memref<2x1x32xf32, #tpu.memory_space<vmem>>, vector<1x1x32xf32>
    %308 = vector.shape_cast %307 : vector<1x1x32xf32> to vector<1x32xf32>
    %c1_121 = arith.constant 1 : index
    %c0_122 = arith.constant 0 : index
    %c0_123 = arith.constant 0 : index
    %309 = vector.load %arg11[%c1_121, %c0_122, %c0_123] : memref<2x1x32xf32, #tpu.memory_space<vmem>>, vector<1x1x32xf32>
    %310 = vector.shape_cast %309 : vector<1x1x32xf32> to vector<1x32xf32>
    %cst_124 = arith.constant dense<0.000000e+00> : vector<2xf32>
    %311 = vector.multi_reduction <add>, %306, %cst_124 [1] : vector<2x32xf32> to vector<2xf32>
    %312 = vector.shape_cast %311 : vector<2xf32> to vector<2x1xf32>
    %cst_125 = arith.constant 3.200000e+01 : f32
    %313 = vector.broadcast %cst_125 : f32 to vector<2x1xf32>
    %314 = arith.divf %312, %313 : vector<2x1xf32>
    %315 = vector.broadcast %314 : vector<2x1xf32> to vector<2x32xf32>
    %316 = arith.subf %306, %315 : vector<2x32xf32>
    %317 = arith.mulf %316, %316 : vector<2x32xf32>
    %cst_126 = arith.constant dense<0.000000e+00> : vector<2xf32>
    %318 = vector.multi_reduction <add>, %317, %cst_126 [1] : vector<2x32xf32> to vector<2xf32>
    %319 = vector.shape_cast %318 : vector<2xf32> to vector<2x1xf32>
    %cst_127 = arith.constant 3.200000e+01 : f32
    %320 = vector.broadcast %cst_127 : f32 to vector<2x1xf32>
    %321 = arith.divf %319, %320 : vector<2x1xf32>
    %322 = vector.broadcast %314 : vector<2x1xf32> to vector<2x32xf32>
    %323 = arith.subf %306, %322 : vector<2x32xf32>
    %cst_128 = arith.constant 9.99999974E-6 : f32
    %324 = vector.broadcast %cst_128 : f32 to vector<2x1xf32>
    %325 = arith.addf %321, %324 : vector<2x1xf32>
    %326 = math.rsqrt %325 : vector<2x1xf32>
    %327 = vector.broadcast %326 : vector<2x1xf32> to vector<2x32xf32>
    %328 = arith.mulf %323, %327 : vector<2x32xf32>
    %329 = vector.broadcast %308 : vector<1x32xf32> to vector<2x32xf32>
    %330 = arith.mulf %328, %329 : vector<2x32xf32>
    %331 = vector.broadcast %310 : vector<1x32xf32> to vector<2x32xf32>
    %332 = arith.addf %330, %331 : vector<2x32xf32>
    %c1_129 = arith.constant 1 : index
    %c0_130 = arith.constant 0 : index
    %c0_131 = arith.constant 0 : index
    %333 = vector.load %arg12[%c1_129, %c0_130, %c0_131] : memref<2x32x64xbf16, #tpu.memory_space<vmem>>, vector<1x32x64xbf16>
    %334 = vector.shape_cast %333 : vector<1x32x64xbf16> to vector<32x64xbf16>
    %c1_132 = arith.constant 1 : index
    %c0_133 = arith.constant 0 : index
    %c0_134 = arith.constant 0 : index
    %335 = vector.load %arg13[%c1_132, %c0_133, %c0_134] : memref<2x1x64xf32, #tpu.memory_space<vmem>>, vector<1x1x64xf32>
    %336 = vector.shape_cast %335 : vector<1x1x64xf32> to vector<1x64xf32>
    %c1_135 = arith.constant 1 : index
    %c0_136 = arith.constant 0 : index
    %c0_137 = arith.constant 0 : index
    %337 = vector.load %arg14[%c1_135, %c0_136, %c0_137] : memref<2x64x32xbf16, #tpu.memory_space<vmem>>, vector<1x64x32xbf16>
    %338 = vector.shape_cast %337 : vector<1x64x32xbf16> to vector<64x32xbf16>
    %c1_138 = arith.constant 1 : index
    %c0_139 = arith.constant 0 : index
    %c0_140 = arith.constant 0 : index
    %339 = vector.load %arg15[%c1_138, %c0_139, %c0_140] : memref<2x1x32xf32, #tpu.memory_space<vmem>>, vector<1x1x32xf32>
    %340 = vector.shape_cast %339 : vector<1x1x32xf32> to vector<1x32xf32>
    %c1_141 = arith.constant 1 : index
    %c0_142 = arith.constant 0 : index
    %c0_143 = arith.constant 0 : index
    %341 = vector.load %arg16[%c1_141, %c0_142, %c0_143] : memref<2x1x32xf32, #tpu.memory_space<vmem>>, vector<1x1x32xf32>
    %342 = vector.shape_cast %341 : vector<1x1x32xf32> to vector<1x32xf32>
    %c1_144 = arith.constant 1 : index
    %c0_145 = arith.constant 0 : index
    %c0_146 = arith.constant 0 : index
    %343 = vector.load %arg17[%c1_144, %c0_145, %c0_146] : memref<2x1x32xf32, #tpu.memory_space<vmem>>, vector<1x1x32xf32>
    %344 = vector.shape_cast %343 : vector<1x1x32xf32> to vector<1x32xf32>
    %345 = arith.truncf %332 : vector<2x32xf32> to vector<2x32xbf16>
    %cst_147 = arith.constant dense<0.000000e+00> : vector<2x64xf32>
    %346 = tpu.matmul %345, %334, %cst_147 {dimension_numbers = #tpu.dot_dimension_numbers<[1], [0], [0], [1], [0, 0, 1, 1], [], []>} : vector<2x32xbf16>, vector<32x64xbf16>, vector<2x64xf32> -> vector<2x64xf32>
    %347 = vector.broadcast %336 : vector<1x64xf32> to vector<2x64xf32>
    %348 = arith.addf %346, %347 : vector<2x64xf32>
    %cst_148 = arith.constant 5.000000e-01 : f32
    %349 = vector.broadcast %cst_148 : f32 to vector<2x64xf32>
    %350 = arith.mulf %349, %348 : vector<2x64xf32>
    %cst_149 = arith.constant 4.471500e-02 : f32
    %351 = vector.broadcast %cst_149 : f32 to vector<2x64xf32>
    %352 = arith.mulf %351, %348 : vector<2x64xf32>
    %353 = arith.mulf %352, %348 : vector<2x64xf32>
    %354 = arith.mulf %353, %348 : vector<2x64xf32>
    %355 = arith.addf %348, %354 : vector<2x64xf32>
    %cst_150 = arith.constant 0.797884583 : f32
    %356 = vector.broadcast %cst_150 : f32 to vector<2x64xf32>
    %357 = arith.mulf %356, %355 : vector<2x64xf32>
    %358 = math.tanh %357 : vector<2x64xf32>
    %cst_151 = arith.constant 1.000000e+00 : f32
    %359 = vector.broadcast %cst_151 : f32 to vector<2x64xf32>
    %360 = arith.addf %359, %358 : vector<2x64xf32>
    %361 = arith.mulf %350, %360 : vector<2x64xf32>
    %362 = arith.truncf %361 : vector<2x64xf32> to vector<2x64xbf16>
    %cst_152 = arith.constant dense<0.000000e+00> : vector<2x32xf32>
    %363 = tpu.matmul %362, %338, %cst_152 {dimension_numbers = #tpu.dot_dimension_numbers<[1], [0], [0], [1], [0, 0, 1, 1], [], []>} : vector<2x64xbf16>, vector<64x32xbf16>, vector<2x32xf32> -> vector<2x32xf32>
    %364 = vector.broadcast %340 : vector<1x32xf32> to vector<2x32xf32>
    %365 = arith.addf %363, %364 : vector<2x32xf32>
    %366 = arith.addf %365, %332 : vector<2x32xf32>
    %cst_153 = arith.constant dense<0.000000e+00> : vector<2xf32>
    %367 = vector.multi_reduction <add>, %366, %cst_153 [1] : vector<2x32xf32> to vector<2xf32>
    %368 = vector.shape_cast %367 : vector<2xf32> to vector<2x1xf32>
    %cst_154 = arith.constant 3.200000e+01 : f32
    %369 = vector.broadcast %cst_154 : f32 to vector<2x1xf32>
    %370 = arith.divf %368, %369 : vector<2x1xf32>
    %371 = vector.broadcast %370 : vector<2x1xf32> to vector<2x32xf32>
    %372 = arith.subf %366, %371 : vector<2x32xf32>
    %373 = arith.mulf %372, %372 : vector<2x32xf32>
    %cst_155 = arith.constant dense<0.000000e+00> : vector<2xf32>
    %374 = vector.multi_reduction <add>, %373, %cst_155 [1] : vector<2x32xf32> to vector<2xf32>
    %375 = vector.shape_cast %374 : vector<2xf32> to vector<2x1xf32>
    %cst_156 = arith.constant 3.200000e+01 : f32
    %376 = vector.broadcast %cst_156 : f32 to vector<2x1xf32>
    %377 = arith.divf %375, %376 : vector<2x1xf32>
    %378 = vector.broadcast %370 : vector<2x1xf32> to vector<2x32xf32>
    %379 = arith.subf %366, %378 : vector<2x32xf32>
    %cst_157 = arith.constant 9.99999974E-6 : f32
    %380 = vector.broadcast %cst_157 : f32 to vector<2x1xf32>
    %381 = arith.addf %377, %380 : vector<2x1xf32>
    %382 = math.rsqrt %381 : vector<2x1xf32>
    %383 = vector.broadcast %382 : vector<2x1xf32> to vector<2x32xf32>
    %384 = arith.mulf %379, %383 : vector<2x32xf32>
    %385 = vector.broadcast %342 : vector<1x32xf32> to vector<2x32xf32>
    %386 = arith.mulf %384, %385 : vector<2x32xf32>
    %387 = vector.broadcast %344 : vector<1x32xf32> to vector<2x32xf32>
    %388 = arith.addf %386, %387 : vector<2x32xf32>
    %c0_158 = arith.constant 0 : index
    %c0_159 = arith.constant 0 : index
    %389 = vector.load %arg18[%c0_158, %c0_159] : memref<32x32xbf16, #tpu.memory_space<vmem>>, vector<32x32xbf16>
    %390 = arith.truncf %388 : vector<2x32xf32> to vector<2x32xbf16>
    %cst_160 = arith.constant dense<0.000000e+00> : vector<2x32xf32>
    %391 = tpu.matmul %390, %389, %cst_160 {dimension_numbers = #tpu.dot_dimension_numbers<[1], [0], [0], [1], [0, 0, 1, 1], [], []>} : vector<2x32xbf16>, vector<32x32xbf16>, vector<2x32xf32> -> vector<2x32xf32>
    %c0_161 = arith.constant 0 : index
    %c0_162 = arith.constant 0 : index
    %392 = vector.load %arg19[%c0_161, %c0_162] : memref<1x32xf32, #tpu.memory_space<vmem>>, vector<1x32xf32>
    %393 = vector.broadcast %392 : vector<1x32xf32> to vector<2x32xf32>
    %394 = arith.addf %391, %393 : vector<2x32xf32>
    %395 = math.tanh %394 : vector<2x32xf32>
    %c0_163 = arith.constant 0 : index
    %c0_164 = arith.constant 0 : index
    %396 = vector.load %arg20[%c0_163, %c0_164] : memref<32x128xbf16, #tpu.memory_space<vmem>>, vector<32x128xbf16>
    %397 = arith.truncf %395 : vector<2x32xf32> to vector<2x32xbf16>
    %cst_165 = arith.constant dense<0.000000e+00> : vector<2x128xf32>
    %398 = tpu.matmul %397, %396, %cst_165 {dimension_numbers = #tpu.dot_dimension_numbers<[1], [0], [0], [1], [0, 0, 1, 1], [], []>} : vector<2x32xbf16>, vector<32x128xbf16>, vector<2x128xf32> -> vector<2x128xf32>
    %c0_166 = arith.constant 0 : index
    %c0_167 = arith.constant 0 : index
    %399 = vector.load %arg21[%c0_166, %c0_167] : memref<1x128xf32, #tpu.memory_space<vmem>>, vector<1x128xf32>
    %400 = vector.broadcast %399 : vector<1x128xf32> to vector<2x128xf32>
    %401 = arith.addf %398, %400 : vector<2x128xf32>
    %c0_168 = arith.constant 0 : index
    %c0_169 = arith.constant 0 : index
    %402 = vector.load %arg22[%c0_168, %c0_169] : memref<2x128xf32, #tpu.memory_space<vmem>>, vector<2x128xf32>
    tpu.vector_store %arg22[%c0_168, %c0_169], %401 {strides = array<i32>} : memref<2x128xf32, #tpu.memory_space<vmem>>, vector<2x128xf32>,
    return
  }
}

</mosaic_0001>

<bundles_post_ra>
// kernel: tpu_custom_call.1
= control target key start
LH: loop header
LB: loop body
LE: loop exit
PB: predicated region body
PF: predicated region fallthrough
CT: control target
= control target key end

     0   :  { %s2809_s0 = inlined_call_operand.hbm [shape: f32[16,32], index: 0, kind: input, shape index: {}]   ;;  %s2810_s1 = inlined_call_operand.hbm [shape: f32[16,16], index: 1, kind: input, shape index: {}]   ;;  %s2811_s2 = inlined_call_operand.hbm [shape: f32[2,16], index: 2, kind: input, shape index: {}]   ;;  %s2812_s3 = inlined_call_operand.hbm [shape: f32[2,16], index: 3, kind: input, shape index: {}]   ;;  %s2813_s4 = inlined_call_operand.vmem [shape: f32[1,32], index: 4, kind: input, shape index: {}]   ;;  %s2814_s5 = inlined_call_operand.hbm [shape: f32[1,32], index: 5, kind: input, shape index: {}]   ;;  %s2815_s6 = inlined_call_operand.vmem [shape: bf16[2,32,96], index: 6, kind: input, shape index: {}]   ;;  %s2816_s7 = inlined_call_operand.hbm [shape: f32[2,1,96], index: 7, kind: input, shape index: {}]   ;;  %s2817_s8 = inlined_call_operand.vmem [shape: bf16[2,32,32], index: 8, kind: input, shape index: {}]   ;;  %s2818_s9 = inlined_call_operand.hbm [shape: f32[2,1,32], index: 9, kind: input, shape index: {}]   ;;  %s2819_s10 = inlined_call_operand.hbm [shape: f32[2,1,32], index: 10, kind: input, shape index: {}]   ;;  %s2820_s11 = inlined_call_operand.hbm [shape: f32[2,1,32], index: 11, kind: input, shape index: {}]   ;;  %s2821_s12 = inlined_call_operand.vmem [shape: bf16[2,32,64], index: 12, kind: input, shape index: {}]   ;;  %s2822_s13 = inlined_call_operand.hbm [shape: f32[2,1,64], index: 13, kind: input, shape index: {}]   ;;  %s2823_s14 = inlined_call_operand.vmem [shape: bf16[2,64,32], index: 14, kind: input, shape index: {}]   ;;  %s2824_s15 = inlined_call_operand.hbm [shape: f32[2,1,32], index: 15, kind: input, shape index: {}]   ;;  %s2825_s16 = inlined_call_operand.hbm [shape: f32[2,1,32], index: 16, kind: input, shape index: {}]   ;;  %s2826_s17 = inlined_call_operand.hbm [shape: f32[2,1,32], index: 17, kind: input, shape index: {}]   ;;  %s2827_s18 = inlined_call_operand.vmem [shape: bf16[32,32], index: 18, kind: input, shape index: {}]   ;;  %s2828_s19 = inlined_call_operand.hbm [shape: f32[1,32], index: 19, kind: input, shape index: {}]   ;;  %s2829_s20 = inlined_call_operand.hbm [shape: bf16[32,128], index: 20, kind: input, shape index: {}]   ;;  %s2830_s21 = inlined_call_operand.vmem [shape: f32[1,128], index: 21, kind: input, shape index: {}]   ;;  %s2831_s22 = inlined_call_operand.hbm [shape: f32[2,128], index: 22, kind: output, shape index: {}]  }
   0x1   :  { %2833 = sst [smem:[#allocation36_spill]] %s2809_s0 }
   0x2   :  { %2834 = sst [smem:[#allocation37_spill]] %s2810_s1 }
   0x3   :  { %2835 = sst [smem:[#allocation38_spill]] %s2811_s2 }
   0x4   :  { %2836 = sst [smem:[#allocation39_spill]] %s2812_s3 }
   0x5   :  { %2837 = sst [smem:[#allocation40_spill]] %s2813_s4 }
   0x6   :  { %2838 = sst [smem:[#allocation41_spill]] %s2814_s5 }
   0x7   :  { %2839 = sst [smem:[#allocation42_spill]] %s2815_s6 }
   0x8   :  { %2840 = sst [smem:[#allocation43_spill]] %s2830_s21 }
   0x9   :  { %2841 = sst [smem:[#allocation44_spill]] %s2831_s22 }
   0xa   :  { %27 = vsyncpa [#allocation3], 0 }
   0xb   :  { %28 = vsyncpa [#allocation6], 0 }
   0xc   :  { %29 = vsyncpa [#allocation9], 0 }
   0xd   :  { %30 = vsyncpa [#allocation12], 0 }
   0xe   :  { %31 = vsyncpa [#allocation15], 0 }
   0xf   :  { %32 = vsyncpa [#allocation18], 0 }
  0x10   :  { %33 = vsyncpa [#allocation21], 0 }
  0x11   :  { %34 = vsyncpa [#allocation24], 0 }
  0x12   :  { %35 = vsyncpa [#allocation4], 0  ;;  %s2842_s29 = sld [smem:[#allocation37_spill]]  ;;  %s2341_s4 = smov [#allocation5]  }
  0x13   :  { %s55_s0 = sshll.u32 %s2341_s4, 4  ;;  %s2843_s5 = sld [smem:[#allocation39_spill]]  ;;  %s56_s0 = int_to_ptr.vmem [resolvable:$true] %s55_s0 }
  0x14   :  { %s2342_s6 = smov 128   ;;  %s2343_s25 = smov 8  }
  0x15   :  { %s2344_s26 = smov [#allocation8]   ;;  %s103_s28 = sshll.u32 %s2816_s7, 4  ;;  %s104_s28 = int_to_ptr.hbm [resolvable:$true] %s103_s28 }
  0x16   :  { %s80_s2 = sshll.u32 %s2344_s26, 4  ;;  %s2346_s22 = smov 16   ;;  %s81_s2 = int_to_ptr.vmem [resolvable:$true] %s80_s2 }
  0x17   :  { %s2347_s21 = smov 1   ;;  %s187_s27 = sshll.u32 %s2825_s16, 4  ;;  %s188_s27 = int_to_ptr.hbm [resolvable:$true] %s187_s27 }
  0x18   :  { %s53_s30 = sshll.u32 %s2842_s29, 4  ;;  %s2345_s29 = smov [#allocation11]   ;;  %s54_s30 = int_to_ptr.hbm [resolvable:$true] %s53_s30 }
  0x19   :  { %s78_s24 = sshll.u32 %s2843_s5, 4  ;;  %s105_s4 = sshll.u32 %s2345_s29, 4  ;;  %s79_s24 = int_to_ptr.hbm [resolvable:$true] %s78_s24  ;;  %s106_s4 = int_to_ptr.vmem [resolvable:$true] %s105_s4 }
  0x1a   :  { %61 = dma.hbm_to_vmem [thread:$0]  %s54_s30, 256, %s56_s0, [#allocation6], %s2342_s6, %s2342_s6, %s2343_s25  }
  0x1b   :  { %83 = dma.hbm_to_vmem [thread:$0]  %s79_s24, 32, %s81_s2, [#allocation9]  }
  0x1c   :  { %s131_s5 = sshll.u32 %s2819_s10, 4  ;;  %s2348_s30 = smov [#allocation14]   ;;  %s132_s5 = int_to_ptr.hbm [resolvable:$true] %s131_s5 }
  0x1d   :  { %111 = dma.hbm_to_vmem [thread:$0]  %s104_s28, 32, %s106_s4, [#allocation12], %s2346_s22, %s2346_s22, %s2347_s21  }
  0x1e   :  { %s133_s0 = sshll.u32 %s2348_s30, 4  ;;  %s159_s24 = sshll.u32 %s2822_s13, 4  ;;  %s134_s0 = int_to_ptr.vmem [resolvable:$true] %s133_s0  ;;  %s160_s24 = int_to_ptr.hbm [resolvable:$true] %s159_s24 }
  0x1f   :  { %139 = dma.hbm_to_vmem [thread:$0]  %s132_s5, 32, %s134_s0, [#allocation15], %s2346_s22, %s2346_s22, %s2347_s21  }
  0x20   :  { %s2349_s3 = smov [#allocation17]   ;;  %s2350_s28 = smov [#allocation20]  }
  0x21   :  { %s161_s29 = sshll.u32 %s2349_s3, 4  ;;  %s189_s13 = sshll.u32 %s2350_s28, 4  ;;  %s162_s29 = int_to_ptr.vmem [resolvable:$true] %s161_s29  ;;  %s190_s13 = int_to_ptr.vmem [resolvable:$true] %s189_s13 }
  0x22   :  { %167 = dma.hbm_to_vmem [thread:$0]  %s160_s24, 32, %s162_s29, [#allocation18], %s2346_s22, %s2346_s22, %s2347_s21  }
  0x23   :  { %s216_s1 = sshll.u32 %s2828_s19, 4  ;;  %s2844_s30 = sld [smem:[#allocation36_spill]]  ;;  %s217_s1 = int_to_ptr.hbm [resolvable:$true] %s216_s1 }
  0x24   :  { %195 = dma.hbm_to_vmem [thread:$0]  %s188_s27, 32, %s190_s13, [#allocation21], %s2346_s22, %s2346_s22, %s2347_s21  }
  0x25   :  { %s2351_s7 = smov [#allocation23]   ;;  %s2352_s24 = smov [#allocation2]  }
  0x26   :  { %s218_s26 = sshll.u32 %s2351_s7, 4  ;;  %s42_s10 = sshll.u32 %s2352_s24, 4  ;;  %s219_s26 = int_to_ptr.vmem [resolvable:$true] %s218_s26  ;;  %s43_s10 = int_to_ptr.vmem [resolvable:$true] %s42_s10 }
  0x27   :  { %221 = dma.hbm_to_vmem [thread:$0]  %s217_s1, 16, %s219_s26, [#allocation24]  }
  0x28   :  { %s2845_s19 = sld [smem:[#allocation38_spill]]  ;;  %s2353_s23 = smov [#allocation7]  }
  0x29   :  { %s40_s0 = sshll.u32 %s2844_s30, 4  ;;  %s2846_s13 = sld [smem:[#allocation41_spill]]  ;;  %s41_s0 = int_to_ptr.hbm [resolvable:$true] %s40_s0 }
  0x2a   :  { %48 = dma.hbm_to_vmem [thread:$0]  %s41_s0, 256, %s43_s10, [#allocation3], %s2342_s6, %s2342_s6, %s2343_s25  }
  0x2b   :  { %s69_s16 = sshll.u32 %s2353_s23, 4  ;;  %s2354_s1 = smov [#allocation10]   ;;  %s70_s16 = int_to_ptr.vmem [resolvable:$true] %s69_s16 }
  0x2c   :  { %s93_s5 = sshll.u32 %s2354_s1, 4  ;;  %s118_s26 = sshll.u32 %s2818_s9, 4  ;;  %s94_s5 = int_to_ptr.vmem [resolvable:$true] %s93_s5  ;;  %s119_s26 = int_to_ptr.hbm [resolvable:$true] %s118_s26 }
  0x2d   :  { %s144_s0 = sshll.u32 %s2820_s11, 4  ;;  %s2355_s10 = smov [#allocation13]   ;;  %s145_s0 = int_to_ptr.hbm [resolvable:$true] %s144_s0 }
  0x2e   :  { %s67_s29 = sshll.u32 %s2845_s19, 4  ;;  %s120_s2 = sshll.u32 %s2355_s10, 4  ;;  %s68_s29 = int_to_ptr.hbm [resolvable:$true] %s67_s29  ;;  %s121_s2 = int_to_ptr.vmem [resolvable:$true] %s120_s2 }
  0x2f   :  { %s91_s4 = sshll.u32 %s2846_s13, 4  ;;  %s2356_s3 = smov [#allocation16]   ;;  %s92_s4 = int_to_ptr.hbm [resolvable:$true] %s91_s4 }
  0x30   :  { %72 = dma.hbm_to_vmem [thread:$0]  %s68_s29, 32, %s70_s16, [#allocation6]  }
  0x31   :  { %96 = dma.hbm_to_vmem [thread:$0]  %s92_s4, 16, %s94_s5, [#allocation9]  }
  0x32   :  { %126 = dma.hbm_to_vmem [thread:$0]  %s119_s26, 32, %s121_s2, [#allocation12], %s2346_s22, %s2346_s22, %s2347_s21  }
  0x33   :  { %s146_s19 = sshll.u32 %s2356_s3, 4  ;;  %s174_s9 = sshll.u32 %s2824_s15, 4  ;;  %s147_s19 = int_to_ptr.vmem [resolvable:$true] %s146_s19  ;;  %s175_s9 = int_to_ptr.hbm [resolvable:$true] %s174_s9 }
  0x34   :  { %152 = dma.hbm_to_vmem [thread:$0]  %s145_s0, 32, %s147_s19, [#allocation15], %s2346_s22, %s2346_s22, %s2347_s21  }
  0x35   :  { %s200_s13 = sshll.u32 %s2826_s17, 4  ;;  %s2357_s4 = smov [#allocation19]   ;;  %s201_s13 = int_to_ptr.hbm [resolvable:$true] %s200_s13 }
  0x36   :  { %s176_s23 = sshll.u32 %s2357_s4, 4  ;;  %s2358_s16 = smov [#allocation22]   ;;  %s177_s23 = int_to_ptr.vmem [resolvable:$true] %s176_s23 }
  0x37   :  { %182 = dma.hbm_to_vmem [thread:$0]  %s175_s9, 32, %s177_s23, [#allocation18], %s2346_s22, %s2346_s22, %s2347_s21  }
  0x38   :  { %s202_s15 = sshll.u32 %s2358_s16, 4  ;;  %s226_s30 = sshll.u32 %s2829_s20, 4  ;;  %s203_s15 = int_to_ptr.vmem [resolvable:$true] %s202_s15  ;;  %s227_s30 = int_to_ptr.hbm [resolvable:$true] %s226_s30 }
  0x39   :  { %208 = dma.hbm_to_vmem [thread:$0]  %s201_s13, 32, %s203_s15, [#allocation21], %s2346_s22, %s2346_s22, %s2347_s21  }
  0x3a   :  { %s2359_s17 = smov [#allocation25]   ;;  %s2360_s26 = smov 64  }
  0x3b   :  { %s228_s7 = sshll.u32 %s2359_s17, 4  ;;  %s2361_s24 = smov 4   ;;  %s229_s7 = int_to_ptr.vmem [resolvable:$true] %s228_s7 }
  0x3c   :  { %234 = dma.hbm_to_vmem [thread:$0]  %s227_s30, 256, %s229_s7, [#allocation24], %s2360_s26, %s2360_s26, %s2361_s24  }
  0x3d   :  { %2323 = dma.done.wait [#allocation3], 256  }
  0x3e   :  { %2324 = vsyncadd [#allocation3], 4294967040 }
  0x3f   :  { %2325 = dma.done.wait [#allocation6], 288  }
  0x40   :  { %2326 = vsyncadd [#allocation6], 4294967008 }
  0x41   :  { %2327 = dma.done.wait [#allocation9], 48  }
  0x42   :  { %2328 = vsyncadd [#allocation9], 4294967248 }
  0x43   :  { %2329 = dma.done.wait [#allocation12], 64  }
  0x44   :  { %2330 = vsyncadd [#allocation12], 4294967232 }
  0x45   :  { %2331 = dma.done.wait [#allocation15], 64  }
  0x46   :  { %2332 = vsyncadd [#allocation15], 4294967232 }
  0x47   :  { %2333 = dma.done.wait [#allocation18], 64  }
  0x48   :  { %2334 = vsyncadd [#allocation18], 4294967232 }
  0x49   :  { %2335 = dma.done.wait [#allocation21], 64  }
  0x4a   :  { %2336 = vsyncadd [#allocation21], 4294967232 }
  0x4b   :  { %2337 = dma.done.wait [#allocation24], 272  }
  0x4c   :  { %2338 = vsyncadd [#allocation24], 4294967024  ;;  %vm302_vm0 = vcmask 261120   ;;  %v298_v0 = vld [vmem:[#allocation2] sm:$0xff]  ;;  %v299_v1 = vld [vmem:[#allocation2 + $0x8] sm:$0xff]  ;;  %v2362_v4 = vmov 32.0  }
  0x4d   :  { %v303_v2 = vsel %vm302_vm0, %v298_v0, 0.0  ;;  %v306_v3 = vsel %vm302_vm0, %v299_v1, 0.0  ;;  %1865 = vrcp.f32 %v2362_v4  ;;  %s2847_s6 = sld [smem:[#allocation42_spill]]  ;;  %v1846_v47 = vld [vmem:[#allocation10] ss:$0 sm:$0xff]  ;;  %s2363_s29 = smov 72  }
  0x4e   :  { %304 = vadd.xlane.f32.xlu0 %v303_v2  ;;  %s2848_s19 = sld [smem:[#allocation40_spill]]  ;;  %v1847_v52 = vld [vmem:[#allocation11] ss:$0 sm:$0xff]  ;;  %s2364_s27 = smov 96   ;;  %vm427_vm8 = vcmask 64512   ;;  %vm448_vm9 = vcmask 130048  }
  0x4f   :  { %s2365_s9 = smov 120   ;;  %s2366_s11 = smov 88   ;;  %vm721_vm10 = vcmask 195584  }
  0x50   :  { %s2367_s28 = smov 104   ;;  %s2368_s13 = smov 80  }
  0x51   :  { %s2369_s4 = smov 112   ;;  %s2370_s23 = smov 56  }
  0x52   :  { %s2371_s16 = smov 48   ;;  %s2372_s15 = smov 40  }
  0x53   :  { %v1866_v5 = vpop.eup %1865  ;;  %v1773_v21 = vld [vmem:[%s2847_s6 + $0x8] sm:$0xff]  ;;  %v1772_v23 = vld [vmem:[%s2847_s6] sm:$0xff]  ;;  %s2373_s1 = smov 24   ;;  %s2849_s3 = sld [smem:[#allocation43_spill]] }
  0x54   :  { %v310_v6 = vmul.f32 32.0, %v1866_v5  ;;  %vm314_vm1 = vweird.f32 %v1866_v5  ;;  %401 = vmatpush.bf16.msra.mxu0 %v1773_v21  ;;  %v1845_v42 = vld [vmem:[%s2848_s19] ss:$0 sm:$0xff]  ;;  %s2374_s19 = smov [#allocation26]   ;;  %s2850_s5 = sld [smem:[#allocation44_spill]] }
  0x56   :  { %307 = vadd.xlane.f32.xlu0 %v306_v3  ;;  %v311_v7 = vsub.f32 1.0, %v310_v6 }
  0x58   :  { %v312_v8 = vmul.f32 %v1866_v5, %v311_v7  ;;  %402 = vmatpush.bf16.msra.mxu0 %v1772_v23 }
  0x5a   :  { %v313_v9 = vadd.f32 %v1866_v5, %v312_v8  ;;  %s1611_s30 = sshll.u32 %s2850_s5, 4  ;;  %s1612_s30 = int_to_ptr.hbm [resolvable:$true] %s1611_s30 }
  0x5c   :  { %v2569_v10 = vsel %vm314_vm1, %v1866_v5, %v313_v9 }
  0xc1   :  { %v305_v11 = vpop.xlane.xlu0 %304 }
  0xc2   :  { %v316_v12 = vmul.f32 %v2569_v10, %v305_v11 }
  0xc4   :  { %v318_v13 = vsub.f32 %v298_v0, %v316_v12 }
  0xc6   :  { %v320_v14 = vmul.f32 %v318_v13, %v318_v13 }
  0xc8   :  { %v322_v15 = vsel %vm302_vm0, %v320_v14, 0.0 }
  0xc9   :  { %323 = vadd.xlane.f32.xlu1 %v322_v15  ;;  %v308_v16 = vpop.xlane.xlu0 %307 }
  0xca   :  { %v317_v17 = vmul.f32 %v2569_v10, %v308_v16 }
  0xcc   :  { %v319_v18 = vsub.f32 %v299_v1, %v317_v17 }
  0xce   :  { %v321_v19 = vmul.f32 %v319_v18, %v319_v18 }
  0xd0   :  { %v325_v20 = vsel %vm302_vm0, %v321_v19, 0.0 }
  0xd1   :  { %326 = vadd.xlane.f32.xlu1 %v325_v20 }
 0x13c   :  { %v324_v22 = vpop.xlane.xlu1 %323 }
 0x13d   :  { %v328_v24 = vmul.f32 %v324_v22, %v2569_v10  ;;  %v365_v22 = vld [vmem:[#allocation5 + $0x8] sm:$0xff] }
 0x13f   :  { %v330_v25 = vadd.f32 1e-05, %v328_v24 }
 0x141   :  { %1867 = vrsqrt.f32 %v330_v25  ;;  %vm338_vm3 = vweird.f32 %v330_v25 }
 0x144   :  { %v327_v26 = vpop.xlane.xlu1 %326 }
 0x145   :  { %v329_v27 = vmul.f32 %v327_v26, %v2569_v10 }
 0x147   :  { %v1868_v28 = vpop.eup %1867  ;;  %v331_v29 = vadd.f32 1e-05, %v329_v27 }
 0x148   :  { %v333_v30 = vmul.f32 %v1868_v28, %v330_v25  ;;  %vm339_vm2 = vweird.f32 %v1868_v28 }
 0x149   :  { %1869 = vrsqrt.f32 %v331_v29  ;;  %vm340_vm4 = vmor %vm338_vm3, %vm339_vm2  ;;  %vm348_vm6 = vweird.f32 %v331_v29  ;;  %vm910_vm2 = vcmask 523264  }
 0x14a   :  { %v334_v31 = vmul.f32 %v1868_v28, %v333_v30 }
 0x14c   :  { %v335_v32 = vmul.f32 0.5, %v334_v31 }
 0x14e   :  { %v336_v33 = vsub.f32 1.5, %v335_v32 }
 0x14f   :  { %v1870_v34 = vpop.eup %1869 }
 0x150   :  { %v337_v35 = vmul.f32 %v1868_v28, %v336_v33  ;;  %v343_v36 = vmul.f32 %v1870_v34, %v331_v29  ;;  %vm349_vm5 = vweird.f32 %v1870_v34 }
 0x151   :  { %vm350_vm7 = vmor %vm348_vm6, %vm349_vm5 }
 0x152   :  { %v344_v37 = vmul.f32 %v1870_v34, %v343_v36  ;;  %v341_v38 = vsel %vm340_vm4, %v1868_v28, %v337_v35 }
 0x153   :  { %v352_v41 = vmul.f32 %v341_v38, %v318_v13 }
 0x154   :  { %v345_v39 = vmul.f32 0.5, %v344_v37 }
 0x155   :  { %v357_v46 = vmul.f32 %v1845_v42, %v352_v41 }
 0x156   :  { %v346_v40 = vsub.f32 1.5, %v345_v39 }
 0x157   :  { %v2586_v49 = vadd.f32 %v1846_v47, %v357_v46 }
 0x158   :  { %v347_v43 = vmul.f32 %v1870_v34, %v346_v40 }
 0x15a   :  { %v351_v44 = vsel %vm350_vm7, %v1870_v34, %v347_v43 }
 0x15b   :  { %v353_v45 = vmul.f32 %v351_v44, %v319_v18  ;;  %v364_v18 = vld [vmem:[#allocation5] sm:$0xff] }
 0x15d   :  { %v358_v48 = vmul.f32 %v1845_v42, %v353_v45 }
 0x15f   :  { %v2588_v50 = vadd.f32 %v1846_v47, %v358_v48 }
 0x161   :  { %v376_v51 = vpack.c.bf16 %v2588_v50, %v2586_v49 }
 0x163   :  { %1636 = vmatmul.msk.bf16.vlgmr.msra.gmra.mxu0 %vm302_vm0, %v376_v51 }
 0x1e0   :  { %v404_v53 = vpop.f32.mrf.mxu0 }
 0x1e1   :  { %v405_v54 = vadd.f32 %v1847_v52, %v404_v53 }
 0x1e3   :  { %v409_v55 = vmul.f32 0.35355338, %v405_v54  ;;  %v413_v57 = vpack.c.bf16 %v405_v54, %v405_v54 }
 0x1e5   :  { %v411_v59 = vpack.c.bf16 %v409_v55, %v409_v55  ;;  %v422_v62 = vunpack.c.l.b16 %v413_v57 }
 0x1e7   :  { %v417_v1 = vunpack.c.l.b16 %v411_v59 }
 0x1e8   :  { %v406_v56 = vpop.f32.mrf.mxu0 }
 0x1e9   :  { %v407_v58 = vadd.f32 %v1847_v52, %v406_v56 }
 0x1eb   :  { %v410_v60 = vmul.f32 0.35355338, %v407_v58  ;;  %v414_v61 = vpack.c.bf16 %v407_v58, %v407_v58 }
 0x1ed   :  { %v412_v63 = vpack.c.bf16 %v410_v60, %v410_v60  ;;  %v423_v0 = vunpack.c.l.b16 %v414_v61 }
 0x1ef   :  { %v418_v2 = vunpack.c.l.b16 %v412_v63  ;;  %v2593_v3 = vpack.c.b16 %v423_v0, %v422_v62 }
 0x1f1   :  { %v419_v4 = vpack.c.b16 %v418_v2, %v417_v1  ;;  %628 = vrot.lane.b32.xlu1 %v2593_v3, %s2363_s29  ;;  %425 = vrot.lane.b32.xlu2 %v2593_v3, %s2364_s27 }
 0x1f3   :  { %492 = vrot.lane.b32.xlu0 %v419_v4, %s2365_s9 }
 0x1f9   :  { %470 = vrot.lane.b32.xlu1 %v2593_v3, %s2360_s26  ;;  %494 = vrot.lane.b32.xlu2 %v2593_v3, %s2366_s11 }
 0x201   :  { %626 = vrot.lane.b32.xlu2 %v419_v4, %s2367_s28 }
 0x209   :  { %561 = vrot.lane.b32.xlu2 %v2593_v3, %s2368_s13 }
 0x211   :  { %559 = vrot.lane.b32.xlu2 %v419_v4, %s2369_s4 }
 0x24b   :  { %v426_v5 = vpop.permute.xlu2 %425 }
 0x24c   :  { %v432_v6 = vsel %vm427_vm8, %v426_v5, 0 }
 0x24d   :  { %441 = vmatpush.bf16.xpose.msra.mxu1 %v432_v6 }
 0x253   :  { %v495_v7 = vpop.permute.xlu2 %494 }
 0x254   :  { %1637 = vmatmul.msk.bf16.vlgmr.msra.gmra.mxu1 %vm427_vm8, %v419_v4  ;;  %v500_v8 = vsel %vm427_vm8, %v495_v7, 0 }
 0x255   :  { %509 = vmatpush.bf16.xpose.msra.mxu3 %v500_v8 }
 0x25b   :  { %v627_v9 = vpop.permute.xlu2 %626 }
 0x263   :  { %v629_v11 = vpop.permute.xlu1 %628  ;;  %v562_v12 = vpop.permute.xlu2 %561 }
 0x264   :  { %v567_v13 = vsel %vm427_vm8, %v562_v12, 0  ;;  %v634_v14 = vsel %vm427_vm8, %v629_v11, 0 }
 0x265   :  { %576 = vmatpush.bf16.xpose.msrb.mxu0 %v567_v13  ;;  %643 = vmatpush.bf16.xpose.msrb.mxu3 %v634_v14  ;;  %v493_v15 = vpop.permute.xlu0 %492 }
 0x266   :  { %1639 = vmatmul.msk.bf16.vlgmr.msra.gmra.mxu3 %vm427_vm8, %v493_v15 }
 0x26b   :  { %v471_v16 = vpop.permute.xlu1 %470  ;;  %v560_v17 = vpop.permute.xlu2 %559 }
 0x26c   :  { %483 = vmatpush.bf16.msra.mxu2 %v471_v16  ;;  %1641 = vmatmul.msk.bf16.vlgmr.msrb.gmra.mxu0 %vm427_vm8, %v560_v17 }
 0x276   :  { %1643 = vmatmul.msk.bf16.vlgmr.msrb.gmra.mxu3 %vm427_vm8, %v627_v9 }
 0x2d1   :  { %v443_v19 = vpop.f32.mrf.mxu1 }
 0x2d2   :  { %v444_v20 = vadd.f32 %v443_v19, %v364_v18 }
 0x2d4   :  { %v449_v21 = vsel %vm448_vm9, %v444_v20, -inf }
 0x2d5   :  { %450 = vmax.xlane.f32.xlu0 %v449_v21 }
 0x2d9   :  { %v445_v23 = vpop.f32.mrf.mxu1 }
 0x2da   :  { %v446_v24 = vadd.f32 %v445_v23, %v365_v22 }
 0x2dc   :  { %v452_v25 = vsel %vm448_vm9, %v446_v24, -inf }
 0x2dd   :  { %453 = vmax.xlane.f32.xlu2 %v452_v25 }
 0x2e9   :  { %v511_v26 = vpop.f32.mrf.mxu3  ;;  %v578_v27 = vpop.f32.mrf.mxu0 }
 0x2ea   :  { %v512_v28 = vadd.f32 %v511_v26, %v364_v18  ;;  %v579_v29 = vadd.f32 %v578_v27, %v364_v18 }
 0x2ec   :  { %v516_v30 = vsel %vm448_vm9, %v512_v28, -inf  ;;  %v583_v31 = vsel %vm448_vm9, %v579_v29, -inf }
 0x2ed   :  { %517 = vmax.xlane.f32.xlu1 %v516_v30  ;;  %584 = vmax.xlane.f32.xlu0 %v583_v31 }
 0x2f1   :  { %v513_v32 = vpop.f32.mrf.mxu3  ;;  %v580_v41 = vpop.f32.mrf.mxu0 }
 0x2f2   :  { %v514_v33 = vadd.f32 %v513_v32, %v365_v22  ;;  %v581_v42 = vadd.f32 %v580_v41, %v365_v22 }
 0x2f4   :  { %v519_v34 = vsel %vm448_vm9, %v514_v33, -inf  ;;  %v586_v43 = vsel %vm448_vm9, %v581_v42, -inf }
 0x2f5   :  { %537 = vrot.lane.b32.xlu2 %v2593_v3, %s2370_s23  ;;  %520 = vmax.xlane.f32.xlu0 %v519_v34  ;;  %s1609_s23 = sshll.u32 %s2374_s19, 4  ;;  %s1610_s23 = int_to_ptr.vmem [resolvable:$true] %s1609_s23 }
 0x2f9   :  { %v645_v35 = vpop.f32.mrf.mxu3 }
 0x2fa   :  { %v646_v36 = vadd.f32 %v645_v35, %v364_v18 }
 0x2fc   :  { %v650_v37 = vsel %vm448_vm9, %v646_v36, -inf }
 0x2fd   :  { %604 = vrot.lane.b32.xlu2 %v2593_v3, %s2371_s16  ;;  %651 = vmax.xlane.f32.xlu0 %v650_v37 }
 0x301   :  { %v647_v38 = vpop.f32.mrf.mxu3 }
 0x302   :  { %v648_v39 = vadd.f32 %v647_v38, %v365_v22 }
 0x304   :  { %v653_v40 = vsel %vm448_vm9, %v648_v39, -inf }
 0x305   :  { %654 = vmax.xlane.f32.xlu1 %v653_v40 }
 0x30d   :  { %587 = vmax.xlane.f32.xlu1 %v586_v43 }
 0x311   :  { %671 = vrot.lane.b32.xlu0 %v2593_v3, %s2372_s15 }
 0x348   :  { %v451_v44 = vpop.xlane.xlu0 %450 }
 0x349   :  { %v455_v45 = vsub.f32 %v444_v20, %v451_v44 }
 0x34b   :  { %v457_v46 = vmul.f32 1.442695, %v455_v45 }
 0x34d   :  { %1871 = vpow2.f32 %v457_v46 }
 0x350   :  { %v454_v47 = vpop.xlane.xlu2 %453 }
 0x351   :  { %v456_v48 = vsub.f32 %v446_v24, %v454_v47 }
 0x353   :  { %v459_v51 = vmul.f32 1.442695, %v456_v48  ;;  %v1872_v53 = vpop.eup %1871 }
 0x354   :  { %v461_v16 = vsel %vm448_vm9, %v1872_v53, 0.0 }
 0x355   :  { %1873 = vpow2.f32 %v459_v51 }
 0x358   :  { %v538_v52 = vpop.permute.xlu2 %537 }
 0x359   :  { %550 = vmatpush.bf16.msrb.mxu2 %v538_v52 }
 0x35b   :  { %v1874_v54 = vpop.eup %1873 }
 0x35c   :  { %v469_v55 = vpack.c.bf16 %v1874_v54, %v1872_v53 }
 0x35e   :  { %1638 = vmatmul.msk.bf16.vlgmr.msra.gmra.mxu2 %vm448_vm9, %v469_v55 }
 0x360   :  { %v518_v56 = vpop.xlane.xlu1 %517  ;;  %v605_v57 = vpop.permute.xlu2 %604 }
 0x361   :  { %v522_v58 = vsub.f32 %v512_v28, %v518_v56  ;;  %v585_v59 = vpop.xlane.xlu0 %584  ;;  %617 = vmatpush.bf16.msrb.mxu1 %v605_v57 }
 0x362   :  { %v589_v61 = vsub.f32 %v579_v29, %v585_v59  ;;  %v464_v29 = vsel %vm448_vm9, %v1874_v54, 0.0 }
 0x363   :  { %v524_v60 = vmul.f32 1.442695, %v522_v58 }
 0x364   :  { %v591_v62 = vmul.f32 1.442695, %v589_v61 }
 0x365   :  { %1875 = vpow2.f32 %v524_v60 }
 0x366   :  { %1877 = vpow2.f32 %v591_v62 }
 0x369   :  { %v521_v63 = vpop.xlane.xlu0 %520 }
 0x36a   :  { %v523_v0 = vsub.f32 %v514_v33, %v521_v63 }
 0x36b   :  { %v1876_v1 = vpop.eup %1875 }
 0x36c   :  { %v526_v2 = vmul.f32 1.442695, %v523_v0  ;;  %v528_v3 = vsel %vm448_vm9, %v1876_v1, 0.0  ;;  %v1878_v4 = vpop.eup %1877  ;;  %v1775_v0 = vld [vmem:[%s2817_s8 + $0x8] sm:$0xff] }
 0x36d   :  { %529 = vadd.xlane.f32.xlu1 %v528_v3  ;;  %v595_v8 = vsel %vm448_vm9, %v1878_v4, 0.0  ;;  %749 = vmatpush.bf16.msra.mxu0 %v1775_v0 }
 0x36e   :  { %1879 = vpow2.f32 %v526_v2 }
 0x371   :  { %v652_v5 = vpop.xlane.xlu0 %651 }
 0x372   :  { %v656_v6 = vsub.f32 %v646_v36, %v652_v5 }
 0x374   :  { %v1880_v7 = vpop.eup %1879  ;;  %v658_v12 = vmul.f32 1.442695, %v656_v6 }
 0x375   :  { %596 = vadd.xlane.f32.xlu1 %v595_v8  ;;  %v531_v9 = vsel %vm448_vm9, %v1880_v7, 0.0  ;;  %v536_v11 = vpack.c.bf16 %v1880_v7, %v1876_v1  ;;  %v1774_v1 = vld [vmem:[%s2817_s8] sm:$0xff] }
 0x376   :  { %532 = vadd.xlane.f32.xlu2 %v531_v9  ;;  %1881 = vpow2.f32 %v658_v12  ;;  %750 = vmatpush.bf16.msra.mxu0 %v1774_v1  ;;  %v1850_v1 = vld [vmem:[#allocation16] ss:$0 sm:$0xff] }
 0x377   :  { %1640 = vmatmul.msk.bf16.vlgmr.msrb.gmra.mxu2 %vm448_vm9, %v536_v11 }
 0x378   :  { %v655_v13 = vpop.xlane.xlu1 %654 }
 0x379   :  { %v657_v14 = vsub.f32 %v648_v39, %v655_v13 }
 0x37b   :  { %v660_v15 = vmul.f32 1.442695, %v657_v14 }
 0x37c   :  { %v1882_v18 = vpop.eup %1881 }
 0x37d   :  { %1883 = vpow2.f32 %v660_v15  ;;  %462 = vadd.xlane.f32.xlu1 %v461_v16  ;;  %v662_v24 = vsel %vm448_vm9, %v1882_v18, 0.0 }
 0x380   :  { %v588_v17 = vpop.xlane.xlu1 %587 }
 0x381   :  { %v590_v19 = vsub.f32 %v581_v42, %v588_v17 }
 0x383   :  { %v1884_v20 = vpop.eup %1883  ;;  %v593_v21 = vmul.f32 1.442695, %v590_v19  ;;  %v672_v22 = vpop.permute.xlu0 %671 }
 0x384   :  { %v670_v23 = vpack.c.bf16 %v1884_v20, %v1882_v18  ;;  %684 = vmatpush.bf16.msra.mxu2 %v672_v22  ;;  %v665_v27 = vsel %vm448_vm9, %v1884_v20, 0.0  ;;  %v1848_v22 = vld [vmem:[#allocation13] ss:$0 sm:$0xff] }
 0x385   :  { %1885 = vpow2.f32 %v593_v21  ;;  %663 = vadd.xlane.f32.xlu1 %v662_v24 }
 0x387   :  { %1644 = vmatmul.msk.bf16.vlgmr.msra.gmra.mxu2 %vm448_vm9, %v670_v23 }
 0x38b   :  { %v1886_v25 = vpop.eup %1885 }
 0x38c   :  { %v598_v26 = vsel %vm448_vm9, %v1886_v25, 0.0  ;;  %v603_v28 = vpack.c.bf16 %v1886_v25, %v1878_v4 }
 0x38d   :  { %599 = vadd.xlane.f32.xlu0 %v598_v26  ;;  %666 = vadd.xlane.f32.xlu1 %v665_v27 }
 0x38e   :  { %1642 = vmatmul.msk.bf16.vlgmr.msrb.gmra.mxu1 %vm448_vm9, %v603_v28 }
 0x395   :  { %465 = vadd.xlane.f32.xlu1 %v464_v29 }
 0x3e0   :  { %v530_v30 = vpop.xlane.xlu1 %529 }
 0x3e1   :  { %v485_v31 = vpop.f32.mrf.mxu2 }
 0x3e8   :  { %v597_v32 = vpop.xlane.xlu1 %596 }
 0x3e9   :  { %v487_v34 = vpop.f32.mrf.mxu2  ;;  %v533_v37 = vpop.xlane.xlu2 %532 }
 0x3f0   :  { %v463_v33 = vpop.xlane.xlu1 %462 }
 0x3f1   :  { %1887 = vrcp.f32 %v463_v33 }
 0x3f2   :  { %1889 = vrcp.f32 %v530_v30 }
 0x3f3   :  { %1891 = vrcp.f32 %v533_v37 }
 0x3f4   :  { %1893 = vrcp.f32 %v597_v32 }
 0x3f7   :  { %v1888_v35 = vpop.eup %1887 }
 0x3f8   :  { %v490_v36 = vmul.f32 %v1888_v35, %v485_v31  ;;  %v664_v39 = vpop.xlane.xlu1 %663  ;;  %v1890_v40 = vpop.eup %1889 }
 0x3f9   :  { %v1892_v41 = vpop.eup %1891  ;;  %1895 = vrcp.f32 %v664_v39 }
 0x3fa   :  { %v552_v38 = vpop.f32.mrf.mxu2  ;;  %v1894_v52 = vpop.eup %1893 }
 0x3fb   :  { %v557_v43 = vmul.f32 %v1890_v40, %v552_v38 }
 0x3ff   :  { %v1896_v53 = vpop.eup %1895 }
 0x400   :  { %v667_v46 = vpop.xlane.xlu1 %666  ;;  %v600_v47 = vpop.xlane.xlu0 %599 }
 0x401   :  { %1897 = vrcp.f32 %v667_v46 }
 0x402   :  { %v554_v42 = vpop.f32.mrf.mxu2  ;;  %1899 = vrcp.f32 %v600_v47 }
 0x403   :  { %v558_v44 = vmul.f32 %v1892_v41, %v554_v42 }
 0x405   :  { %v1830_v45 = vpack.i.bf16 %v558_v44, %v557_v43  ;;  %v1776_v43 = vld [vmem:[%s2821_s12] sm:$0xff] }
 0x407   :  { %1831 = vrot.lane.b32.xlu2 %v1830_v45, %s2343_s25  ;;  %v1898_v54 = vpop.eup %1897 }
 0x408   :  { %v1900_v56 = vpop.eup %1899  ;;  %v466_v2 = vpop.xlane.xlu1 %465 }
 0x409   :  { %1901 = vrcp.f32 %v466_v2 }
 0x40a   :  { %v686_v48 = vpop.f32.mrf.mxu2 }
 0x40b   :  { %v619_v51 = vpop.f32.mrf.mxu1  ;;  %v691_v57 = vmul.f32 %v1896_v53, %v686_v48 }
 0x40c   :  { %v624_v60 = vmul.f32 %v1894_v52, %v619_v51 }
 0x40f   :  { %v1902_v4 = vpop.eup %1901 }
 0x410   :  { %v491_v8 = vmul.f32 %v1902_v4, %v487_v34 }
 0x412   :  { %v688_v55 = vpop.f32.mrf.mxu2 }
 0x413   :  { %v692_v58 = vmul.f32 %v1898_v54, %v688_v55  ;;  %v621_v59 = vpop.f32.mrf.mxu1 }
 0x414   :  { %v625_v61 = vmul.f32 %v1900_v56, %v621_v59 }
 0x415   :  { %v1840_v62 = vpack.i.bf16 %v692_v58, %v691_v57 }
 0x416   :  { %v1835_v63 = vpack.i.bf16 %v625_v61, %v624_v60  ;;  %v1849_v61 = vld [vmem:[#allocation14] ss:$0 sm:$0xff] }
 0x417   :  { %1841 = vrot.lane.b32.xlu0 %v1840_v62, %s2373_s1 }
 0x418   :  { %1836 = vrot.lane.b32.xlu1 %v1835_v63, %s2346_s22 }
 0x461   :  { %v1832_v3 = vpop.permute.xlu2 %1831 }
 0x462   :  { %v1834_v5 = vunpack.i.h.bf16 %v1832_v3  ;;  %v1833_v6 = vunpack.i.l.bf16 %v1832_v3 }
 0x464   :  { %v717_v13 = vsel %vm427_vm8, %v490_v36, %v1833_v6  ;;  %v718_v14 = vsel %vm427_vm8, %v491_v8, %v1834_v5  ;;  %v1781_v8 = vld [vmem:[%s2823_s14 + $0x18] sm:$0xff] }
 0x465   :  { %918 = vmatpush.bf16.msra.mxu3 %v1781_v8 }
 0x489   :  { %v1842_v7 = vpop.permute.xlu0 %1841 }
 0x48a   :  { %v1837_v9 = vpop.permute.xlu1 %1836  ;;  %v1844_v15 = vunpack.i.h.bf16 %v1842_v7  ;;  %v1843_v16 = vunpack.i.l.bf16 %v1842_v7 }
 0x48b   :  { %v1839_v11 = vunpack.i.h.bf16 %v1837_v9  ;;  %v1838_v12 = vunpack.i.l.bf16 %v1837_v9  ;;  %v1780_v9 = vld [vmem:[%s2823_s14 + $0x10] sm:$0xff] }
 0x48c   :  { %919 = vmatpush.bf16.msra.mxu3 %v1780_v9 }
 0x48d   :  { %v720_v17 = vsel %vm448_vm9, %v718_v14, %v1839_v11  ;;  %v719_v18 = vsel %vm448_vm9, %v717_v13, %v1838_v12  ;;  %v1779_v11 = vld [vmem:[%s2823_s14 + $0x8] sm:$0xff]  ;;  %v1778_v12 = vld [vmem:[%s2823_s14] sm:$0xff] }
 0x48e   :  { %v722_v19 = vsel %vm721_vm10, %v719_v18, %v1843_v16  ;;  %v723_v20 = vsel %vm721_vm10, %v720_v17, %v1844_v15  ;;  %v1851_v13 = vld [vmem:[#allocation17] ss:$0 sm:$0xff] }
 0x48f   :  { %v724_v21 = vpack.c.bf16 %v723_v20, %v722_v19 }
 0x490   :  { %920 = vmatpush.bf16.msra.mxu3 %v1779_v11 }
 0x491   :  { %1653 = vmatmul.msk.bf16.vlgmr.msra.gmra.mxu0 %vm302_vm0, %v724_v21 }
 0x494   :  { %921 = vmatpush.bf16.msra.mxu3 %v1778_v12 }
 0x50e   :  { %v752_v23 = vpop.f32.mrf.mxu0 }
 0x50f   :  { %v753_v24 = vadd.f32 %v1848_v22, %v752_v23 }
 0x511   :  { %v757_v25 = vadd.f32 %v753_v24, %v2586_v49 }
 0x513   :  { %v761_v26 = vsel %vm302_vm0, %v757_v25, 0.0 }
 0x514   :  { %762 = vadd.xlane.f32.xlu2 %v761_v26 }
 0x516   :  { %v754_v27 = vpop.f32.mrf.mxu0 }
 0x517   :  { %v755_v28 = vadd.f32 %v1848_v22, %v754_v27 }
 0x519   :  { %v758_v29 = vadd.f32 %v755_v28, %v2588_v50  ;;  %v1777_v50 = vld [vmem:[%s2821_s12 + $0x8] sm:$0xff] }
 0x51a   :  { %856 = vmatpush.bf16.msra.mxu1 %v1777_v50 }
 0x51b   :  { %v764_v30 = vsel %vm302_vm0, %v758_v29, 0.0 }
 0x51c   :  { %765 = vadd.xlane.f32.xlu1 %v764_v30 }
 0x51e   :  { %857 = vmatpush.bf16.msra.mxu1 %v1776_v43 }
 0x587   :  { %v763_v31 = vpop.xlane.xlu2 %762 }
 0x588   :  { %v767_v32 = vmul.f32 %v763_v31, %v2569_v10 }
 0x58a   :  { %v769_v33 = vsub.f32 %v757_v25, %v767_v32 }
 0x58c   :  { %v771_v34 = vmul.f32 %v769_v33, %v769_v33 }
 0x58e   :  { %v773_v35 = vsel %vm302_vm0, %v771_v34, 0.0 }
 0x58f   :  { %v766_v36 = vpop.xlane.xlu1 %765  ;;  %774 = vadd.xlane.f32.xlu0 %v773_v35 }
 0x590   :  { %v768_v49 = vmul.f32 %v766_v36, %v2569_v10 }
 0x592   :  { %v770_v37 = vsub.f32 %v758_v29, %v768_v49  ;;  %v1852_v49 = vld [vmem:[#allocation19] ss:$0 sm:$0xff] }
 0x594   :  { %v772_v38 = vmul.f32 %v770_v37, %v770_v37 }
 0x596   :  { %v776_v39 = vsel %vm302_vm0, %v772_v38, 0.0 }
 0x597   :  { %777 = vadd.xlane.f32.xlu2 %v776_v39 }
 0x602   :  { %v775_v40 = vpop.xlane.xlu0 %774 }
 0x603   :  { %v779_v41 = vmul.f32 %v775_v40, %v2569_v10 }
 0x605   :  { %v781_v42 = vadd.f32 1e-05, %v779_v41 }
 0x607   :  { %1903 = vrsqrt.f32 %v781_v42  ;;  %vm789_vm12 = vweird.f32 %v781_v42 }
 0x60a   :  { %v778_v44 = vpop.xlane.xlu2 %777 }
 0x60b   :  { %v780_v45 = vmul.f32 %v778_v44, %v2569_v10  ;;  %v1783_v44 = vld [vmem:[%s2847_s6 + $0x18] sm:$0xff] }
 0x60c   :  { %1048 = vmatpush.bf16.msrb.mxu0 %v1783_v44 }
 0x60d   :  { %v1904_v46 = vpop.eup %1903  ;;  %v782_v47 = vadd.f32 1e-05, %v780_v45  ;;  %v1782_v45 = vld [vmem:[%s2847_s6 + $0x10] sm:$0xff] }
 0x60e   :  { %v784_v48 = vmul.f32 %v1904_v46, %v781_v42  ;;  %vm790_vm11 = vweird.f32 %v1904_v46 }
 0x60f   :  { %1905 = vrsqrt.f32 %v782_v47  ;;  %vm791_vm13 = vmor %vm789_vm12, %vm790_vm11  ;;  %vm799_vm15 = vweird.f32 %v782_v47  ;;  %vm1110_vm12 = vcmask 123904  }
 0x610   :  { %v785_v51 = vmul.f32 %v1904_v46, %v784_v48  ;;  %1049 = vmatpush.bf16.msrb.mxu0 %v1782_v45 }
 0x612   :  { %v786_v52 = vmul.f32 0.5, %v785_v51 }
 0x614   :  { %v787_v53 = vsub.f32 1.5, %v786_v52 }
 0x615   :  { %v1906_v54 = vpop.eup %1905 }
 0x616   :  { %v788_v55 = vmul.f32 %v1904_v46, %v787_v53  ;;  %v794_v56 = vmul.f32 %v1906_v54, %v782_v47  ;;  %vm800_vm14 = vweird.f32 %v1906_v54 }
 0x617   :  { %vm801_vm1 = vmor %vm799_vm15, %vm800_vm14 }
 0x618   :  { %v795_v57 = vmul.f32 %v1906_v54, %v794_v56  ;;  %v792_v58 = vsel %vm791_vm13, %v1904_v46, %v788_v55  ;;  %vm1359_vm13 = vcmask 254976  }
 0x619   :  { %v803_v62 = vmul.f32 %v792_v58, %v769_v33 }
 0x61a   :  { %v796_v59 = vmul.f32 0.5, %v795_v57 }
 0x61b   :  { %v808_v2 = vmul.f32 %v1849_v61, %v803_v62 }
 0x61c   :  { %v797_v60 = vsub.f32 1.5, %v796_v59 }
 0x61d   :  { %v813_v5 = vadd.f32 %v1850_v1, %v808_v2 }
 0x61e   :  { %v798_v63 = vmul.f32 %v1906_v54, %v797_v60 }
 0x620   :  { %v802_v0 = vsel %vm801_vm1, %v1906_v54, %v798_v63  ;;  %v2700_v63 = vld [vmem:[#allocation11 + $0x1] ss:$0 sm:$0xff] }
 0x621   :  { %v804_v3 = vmul.f32 %v802_v0, %v770_v37 }
 0x623   :  { %v809_v4 = vmul.f32 %v1849_v61, %v804_v3 }
 0x625   :  { %v814_v6 = vadd.f32 %v1850_v1, %v809_v4 }
 0x627   :  { %v831_v7 = vpack.c.bf16 %v814_v6, %v813_v5 }
 0x629   :  { %1662 = vmatmul.msk.bf16.vlgmr.msra.gmra.mxu1 %vm302_vm0, %v831_v7 }
 0x6a6   :  { %v859_v14 = vpop.f32.mrf.mxu1 }
 0x6a7   :  { %v860_v15 = vadd.f32 %v1851_v13, %v859_v14 }
 0x6a9   :  { %v866_v16 = vmul.f32 0.044715, %v860_v15  ;;  %v864_v31 = vmul.f32 0.5, %v860_v15 }
 0x6ab   :  { %v868_v17 = vmul.f32 %v866_v16, %v860_v15  ;;  %v1853_v16 = vld [vmem:[#allocation20] ss:$0 sm:$0xff] }
 0x6ad   :  { %v870_v18 = vmul.f32 %v868_v17, %v860_v15 }
 0x6ae   :  { %v861_v19 = vpop.f32.mrf.mxu1 }
 0x6af   :  { %v872_v20 = vadd.f32 %v870_v18, %v860_v15  ;;  %v862_v21 = vadd.f32 %v1851_v13, %v861_v19 }
 0x6b1   :  { %v867_v22 = vmul.f32 0.044715, %v862_v21  ;;  %v874_v23 = vmul.f32 0.7978846, %v872_v20  ;;  %v865_v32 = vmul.f32 0.5, %v862_v21 }
 0x6b3   :  { %v869_v24 = vmul.f32 %v867_v22, %v862_v21  ;;  %1907 = vtanh.f32 %v874_v23 }
 0x6b5   :  { %v871_v25 = vmul.f32 %v869_v24, %v862_v21 }
 0x6b7   :  { %v873_v26 = vadd.f32 %v871_v25, %v862_v21  ;;  %v1854_v21 = vld [vmem:[#allocation22] ss:$0 sm:$0xff] }
 0x6b9   :  { %v875_v27 = vmul.f32 0.7978846, %v873_v26  ;;  %v1908_v28 = vpop.eup %1907 }
 0x6ba   :  { %v878_v29 = vadd.f32 1.0, %v1908_v28 }
 0x6bb   :  { %1909 = vtanh.f32 %v875_v27  ;;  %v984_v27 = vld [vmem:[#allocation8] sm:$0x3] }
 0x6bc   :  { %v880_v34 = vmul.f32 %v878_v29, %v864_v31 }
 0x6c1   :  { %v1910_v30 = vpop.eup %1909 }
 0x6c2   :  { %v879_v33 = vadd.f32 1.0, %v1910_v30 }
 0x6c4   :  { %v881_v35 = vmul.f32 %v879_v33, %v865_v32 }
 0x6c6   :  { %v882_v36 = vpack.c.bf16 %v881_v35, %v880_v34 }
 0x6c8   :  { %1679 = vmatmul.msk.bf16.vlgmr.msra.gmra.mxu3 %vm910_vm2, %v882_v36 }
 0x74b   :  { %v923_v37 = vpop.f32.mrf.mxu3 }
 0x74c   :  { %v924_v38 = vadd.f32 %v1852_v49, %v923_v37 }
 0x74e   :  { %v928_v39 = vadd.f32 %v924_v38, %v813_v5 }
 0x750   :  { %v930_v50 = vsel %vm302_vm0, %v928_v39, 0.0 }
 0x751   :  { %931 = vadd.xlane.f32.xlu0 %v930_v50 }
 0x753   :  { %v925_v40 = vpop.f32.mrf.mxu3 }
 0x754   :  { %v926_v41 = vadd.f32 %v1852_v49, %v925_v40 }
 0x756   :  { %v929_v42 = vadd.f32 %v926_v41, %v814_v6 }
 0x758   :  { %v933_v43 = vsel %vm302_vm0, %v929_v42, 0.0 }
 0x759   :  { %934 = vadd.xlane.f32.xlu1 %v933_v43 }
 0x765   :  { %1058 = vrot.lane.b32.xlu0 %v1783_v44, %s2364_s27 }
 0x7c4   :  { %v932_v46 = vpop.xlane.xlu0 %931 }
 0x7c5   :  { %v936_v47 = vmul.f32 %v932_v46, %v2569_v10 }
 0x7c7   :  { %v938_v48 = vsub.f32 %v928_v39, %v936_v47 }
 0x7c9   :  { %v940_v51 = vmul.f32 %v938_v48, %v938_v48 }
 0x7cb   :  { %v942_v52 = vsel %vm302_vm0, %v940_v51, 0.0 }
 0x7cc   :  { %v935_v53 = vpop.xlane.xlu1 %934  ;;  %943 = vadd.xlane.f32.xlu1 %v942_v52 }
 0x7cd   :  { %v937_v54 = vmul.f32 %v935_v53, %v2569_v10 }
 0x7cf   :  { %v939_v55 = vsub.f32 %v929_v42, %v937_v54 }
 0x7d1   :  { %v941_v56 = vmul.f32 %v939_v55, %v939_v55 }
 0x7d3   :  { %v945_v57 = vsel %vm302_vm0, %v941_v56, 0.0 }
 0x7d4   :  { %946 = vadd.xlane.f32.xlu2 %v945_v57  ;;  %v1008_v57 = vld [vmem:[#allocation7] sm:$0x3] }
 0x7d7   :  { %v1059_v58 = vpop.permute.xlu0 %1058 }
 0x7d8   :  { %1074 = vmatpush.bf16.msrb.mxu1 %v1059_v58 }
 0x7e5   :  { %1062 = vrot.lane.b32.xlu1 %v2700_v63, %s2364_s27 }
 0x7ec   :  { %1056 = vrot.lane.b32.xlu2 %v1782_v45, %s2364_s27 }
 0x83f   :  { %v944_v59 = vpop.xlane.xlu1 %943 }
 0x840   :  { %v948_v60 = vmul.f32 %v944_v59, %v2569_v10 }
 0x842   :  { %v950_v61 = vadd.f32 1e-05, %v948_v60 }
 0x844   :  { %1911 = vrsqrt.f32 %v950_v61  ;;  %vm958_vm4 = vweird.f32 %v950_v61 }
 0x847   :  { %v947_v62 = vpop.xlane.xlu2 %946 }
 0x848   :  { %v949_v0 = vmul.f32 %v947_v62, %v2569_v10 }
 0x84a   :  { %v1912_v1 = vpop.eup %1911  ;;  %v951_v2 = vadd.f32 1e-05, %v949_v0 }
 0x84b   :  { %v953_v3 = vmul.f32 %v1912_v1, %v950_v61  ;;  %vm959_vm3 = vweird.f32 %v1912_v1 }
 0x84c   :  { %1913 = vrsqrt.f32 %v951_v2  ;;  %vm960_vm5 = vmor %vm958_vm4, %vm959_vm3  ;;  %vm968_vm7 = vweird.f32 %v951_v2 }
 0x84d   :  { %v954_v4 = vmul.f32 %v1912_v1, %v953_v3 }
 0x84f   :  { %v955_v5 = vmul.f32 0.5, %v954_v4  ;;  %v1057_v6 = vpop.permute.xlu2 %1056 }
 0x850   :  { %1075 = vmatpush.bf16.msrb.mxu1 %v1057_v6 }
 0x851   :  { %v956_v7 = vsub.f32 1.5, %v955_v5 }
 0x852   :  { %v1914_v8 = vpop.eup %1913 }
 0x853   :  { %v957_v9 = vmul.f32 %v1912_v1, %v956_v7  ;;  %v963_v11 = vmul.f32 %v1914_v8, %v951_v2  ;;  %vm969_vm6 = vweird.f32 %v1914_v8 }
 0x854   :  { %vm970_vm11 = vmor %vm968_vm7, %vm969_vm6 }
 0x855   :  { %v964_v12 = vmul.f32 %v1914_v8, %v963_v11  ;;  %v961_v13 = vsel %vm960_vm5, %v1912_v1, %v957_v9 }
 0x856   :  { %v972_v17 = vmul.f32 %v961_v13, %v938_v48 }
 0x857   :  { %v965_v14 = vmul.f32 0.5, %v964_v12  ;;  %v1063_v29 = vpop.permute.xlu1 %1062 }
 0x858   :  { %v977_v22 = vmul.f32 %v1853_v16, %v972_v17 }
 0x859   :  { %v966_v15 = vsub.f32 1.5, %v965_v14 }
 0x85a   :  { %v982_v25 = vadd.f32 %v1854_v21, %v977_v22 }
 0x85b   :  { %v967_v18 = vmul.f32 %v1914_v8, %v966_v15 }
 0x85d   :  { %v971_v19 = vsel %vm970_vm11, %v1914_v8, %v967_v18 }
 0x85e   :  { %v973_v20 = vmul.f32 %v971_v19, %v939_v55 }
 0x860   :  { %v978_v23 = vmul.f32 %v1853_v16, %v973_v20 }
 0x862   :  { %v983_v24 = vadd.f32 %v1854_v21, %v978_v23 }
 0x864   :  { %1002 = vmatpush.msrb.mxu2 %v983_v24  ;;  %v1055_v26 = vpack.c.bf16 %v983_v24, %v982_v25 }
 0x866   :  { %1003 = vmatpush.msrb.mxu2 %v982_v25  ;;  %1698 = vmatmul.msk.bf16.vlgmr.msrb.gmra.mxu1 %vm302_vm0, %v1055_v26 }
 0x867   :  { %1680 = vmatmul.msk.f32.vlgmr.msrb.gmra.mxu2 %vm448_vm9, %v984_v27 }
 0x8e3   :  { %v1077_v28 = vpop.f32.mrf.mxu1 }
 0x8e4   :  { %v1078_v30 = vadd.f32 %v1077_v28, %v1063_v29 }
 0x8e6   :  { %v1084_v34 = vpack.c.bf16 %v1078_v30, %v1078_v30 }
 0x8e8   :  { %v1088_v49 = vunpack.c.l.b16 %v1084_v34 }
 0x8ea   :  { %v2707_v31 = vpop.f32.mrf.mxu2 }
 0x8eb   :  { %v1023_v32 = vpack.c.bf16 %v2707_v31, %v2707_v31  ;;  %v1079_v33 = vpop.f32.mrf.mxu1 }
 0x8ec   :  { %v1080_v35 = vadd.f32 %v1079_v33, %v1063_v29 }
 0x8ed   :  { %1697 = vmatmul.msk.bf16.vlgmr.msrb.gmra.mxu0 %vm302_vm0, %v1023_v32 }
 0x8ee   :  { %v1085_v36 = vpack.c.bf16 %v1080_v35, %v1080_v35 }
 0x8f0   :  { %v1089_v37 = vunpack.c.l.b16 %v1085_v36 }
 0x8f2   :  { %v2712_v38 = vpack.c.b16 %v1089_v37, %v1088_v49 }
 0x8f4   :  { %1201 = vrot.lane.b32.xlu2 %v2712_v38, %s2369_s4  ;;  %1147 = vrot.lane.b32.xlu0 %v2712_v38, %s2365_s9  ;;  %v1095_v39 = vsel %vm427_vm8, %v2712_v38, 0 }
 0x8f5   :  { %1104 = vmatpush.bf16.xpose.msrb.mxu3 %v1095_v39 }
 0x8fc   :  { %1255 = vrot.lane.b32.xlu2 %v2712_v38, %s2367_s28 }
 0x94e   :  { %v1202_v50 = vpop.permute.xlu2 %1201 }
 0x94f   :  { %v1207_v40 = vsel %vm427_vm8, %v1202_v50, 0 }
 0x950   :  { %1216 = vmatpush.bf16.xpose.msra.mxu3 %v1207_v40 }
 0x956   :  { %v1256_v41 = vpop.permute.xlu2 %1255 }
 0x957   :  { %v1261_v44 = vsel %vm427_vm8, %v1256_v41, 0 }
 0x966   :  { %v1148_v42 = vpop.permute.xlu0 %1147 }
 0x967   :  { %v1153_v43 = vsel %vm427_vm8, %v1148_v42, 0 }
 0x968   :  { %1162 = vmatpush.bf16.xpose.msra.mxu0 %v1153_v43 }
 0x96a   :  { %v1051_v45 = vpop.f32.mrf.mxu0 }
 0x96b   :  { %v1052_v46 = vadd.f32 %v2700_v63, %v1051_v45 }
 0x96d   :  { %v1082_v47 = vmul.f32 0.35355338, %v1052_v46 }
 0x96f   :  { %v1083_v48 = vpack.c.bf16 %v1082_v47, %v1082_v47 }
 0x970   :  { %1270 = vmatpush.bf16.xpose.msrb.mxu0 %v1261_v44 }
 0x971   :  { %v1143_v51 = vunpack.c.l.b16 %v1083_v48  ;;  %1699 = vmatmul.msk.bf16.vlgmr.msrb.gmra.mxu3 %vm427_vm8, %v1083_v48 }
 0x972   :  { %v1053_v52 = vpop.f32.mrf.mxu0 }
 0x973   :  { %v1144_v53 = vpack.c.b16 %v1143_v51, %v1143_v51 }
 0x975   :  { %1199 = vrot.lane.b32.xlu1 %v1144_v53, %s2369_s4  ;;  %1145 = vrot.lane.b32.xlu0 %v1144_v53, %s2365_s9 }
 0x97d   :  { %1253 = vrot.lane.b32.xlu0 %v1144_v53, %s2367_s28 }
 0x985   :  { %1122 = vrot.lane.b32.xlu0 %v2712_v38, %s2364_s27 }
 0x9e7   :  { %v1200_v54 = vpop.permute.xlu1 %1199  ;;  %v1146_v55 = vpop.permute.xlu0 %1145 }
 0x9e8   :  { %1701 = vmatmul.msk.bf16.vlgmr.msra.gmra.mxu0 %vm427_vm8, %v1146_v55  ;;  %1703 = vmatmul.msk.bf16.vlgmr.msra.gmra.mxu3 %vm427_vm8, %v1200_v54 }
 0x9ef   :  { %v1254_v56 = vpop.permute.xlu0 %1253 }
 0x9f4   :  { %v1106_v58 = vpop.f32.mrf.mxu3 }
 0x9f5   :  { %v1107_v59 = vadd.f32 %v1106_v58, %v1008_v57  ;;  %v1784_v58 = vld [vmem:[%s2817_s8 + $0x10] sm:$0xff] }
 0x9f7   :  { %v1123_v60 = vpop.permute.xlu0 %1122  ;;  %v1111_v61 = vsel %vm1110_vm12, %v1107_v59, -inf }
 0x9f8   :  { %1135 = vmatpush.bf16.msra.mxu2 %v1123_v60  ;;  %1705 = vmatmul.msk.bf16.vlgmr.msrb.gmra.mxu0 %vm427_vm8, %v1254_v56 }
 0x9f9   :  { %1112 = vmax.xlane.f32.xlu1 %v1111_v61 }
 0x9fc   :  { %v1108_v62 = vpop.f32.mrf.mxu3 }
 0xa12   :  { %1179 = vrot.lane.b32.xlu1 %v2712_v38, %s2366_s11 }
 0xa65   :  { %v1164_v63 = vpop.f32.mrf.mxu0 }
 0xa66   :  { %v1165_v0 = vadd.f32 %v1164_v63, %v1008_v57 }
 0xa68   :  { %v1168_v1 = vsel %vm1110_vm12, %v1165_v0, -inf }
 0xa69   :  { %1169 = vmax.xlane.f32.xlu2 %v1168_v1 }
 0xa6b   :  { %v1218_v2 = vpop.f32.mrf.mxu3 }
 0xa6c   :  { %v1219_v3 = vadd.f32 %v1218_v2, %v1008_v57  ;;  %v1113_v4 = vpop.xlane.xlu1 %1112 }
 0xa6d   :  { %v1114_v5 = vsub.f32 %v1107_v59, %v1113_v4  ;;  %v1166_v6 = vpop.f32.mrf.mxu0 }
 0xa6e   :  { %v1222_v7 = vsel %vm1110_vm12, %v1219_v3, -inf }
 0xa6f   :  { %v1115_v8 = vmul.f32 1.442695, %v1114_v5  ;;  %1223 = vmax.xlane.f32.xlu0 %v1222_v7  ;;  %v1856_v5 = vld [vmem:[#allocation13 + $0x1] ss:$0 sm:$0xff] }
 0xa71   :  { %1915 = vpow2.f32 %v1115_v8 }
 0xa73   :  { %v1220_v9 = vpop.f32.mrf.mxu3 }
 0xa75   :  { %v1272_v11 = vpop.f32.mrf.mxu0 }
 0xa76   :  { %v1273_v12 = vadd.f32 %v1272_v11, %v1008_v57  ;;  %v1785_v57 = vld [vmem:[%s2817_s8 + $0x18] sm:$0xff] }
 0xa77   :  { %v1916_v13 = vpop.eup %1915  ;;  %1347 = vmatpush.bf16.msrb.mxu3 %v1785_v57 }
 0xa78   :  { %v1121_v14 = vpack.c.bf16 %v1916_v13, %v1916_v13  ;;  %v1276_v15 = vsel %vm1110_vm12, %v1273_v12, -inf  ;;  %v1117_v33 = vsel %vm1110_vm12, %v1916_v13, 0.0 }
 0xa79   :  { %1277 = vmax.xlane.f32.xlu2 %v1276_v15 }
 0xa7a   :  { %1700 = vmatmul.msk.bf16.vlgmr.msra.gmra.mxu2 %vm448_vm9, %v1121_v14 }
 0xa7b   :  { %1348 = vmatpush.bf16.msrb.mxu3 %v1784_v58 }
 0xa7d   :  { %v1274_v16 = vpop.f32.mrf.mxu0 }
 0xa83   :  { %1287 = vrot.lane.b32.xlu0 %v2712_v38, %s2363_s29 }
 0xa84   :  { %v1180_v17 = vpop.permute.xlu1 %1179 }
 0xa85   :  { %1192 = vmatpush.bf16.msra.mxu1 %v1180_v17  ;;  %v1787_v17 = vld [vmem:[%s2821_s12 + $0x18] sm:$0xff] }
 0xa91   :  { %1233 = vrot.lane.b32.xlu2 %v2712_v38, %s2368_s13 }
 0xadc   :  { %v1170_v18 = vpop.xlane.xlu2 %1169 }
 0xadd   :  { %v1171_v19 = vsub.f32 %v1165_v0, %v1170_v18 }
 0xadf   :  { %v1172_v20 = vmul.f32 1.442695, %v1171_v19 }
 0xae1   :  { %1917 = vpow2.f32 %v1172_v20 }
 0xae2   :  { %v1224_v21 = vpop.xlane.xlu0 %1223 }
 0xae3   :  { %v1225_v22 = vsub.f32 %v1219_v3, %v1224_v21 }
 0xae5   :  { %v1226_v23 = vmul.f32 1.442695, %v1225_v22 }
 0xae7   :  { %v1918_v24 = vpop.eup %1917  ;;  %1919 = vpow2.f32 %v1226_v23 }
 0xae8   :  { %v1178_v25 = vpack.c.bf16 %v1918_v24, %v1918_v24  ;;  %v1174_v26 = vsel %vm1110_vm12, %v1918_v24, 0.0 }
 0xae9   :  { %1175 = vadd.xlane.f32.xlu1 %v1174_v26 }
 0xaea   :  { %1702 = vmatmul.msk.bf16.vlgmr.msra.gmra.mxu1 %vm448_vm9, %v1178_v25 }
 0xaec   :  { %v1278_v27 = vpop.xlane.xlu2 %1277 }
 0xaed   :  { %v1920_v28 = vpop.eup %1919  ;;  %v1279_v29 = vsub.f32 %v1273_v12, %v1278_v27  ;;  %v1857_v27 = vld [vmem:[#allocation14 + $0x1] ss:$0 sm:$0xff] }
 0xaee   :  { %v1228_v30 = vsel %vm1110_vm12, %v1920_v28, 0.0  ;;  %v1232_v36 = vpack.c.bf16 %v1920_v28, %v1920_v28 }
 0xaef   :  { %v1280_v32 = vmul.f32 1.442695, %v1279_v29  ;;  %1229 = vadd.xlane.f32.xlu0 %v1228_v30  ;;  %v1858_v29 = vld [vmem:[#allocation16 + $0x1] ss:$0 sm:$0xff] }
 0xaf1   :  { %1921 = vpow2.f32 %v1280_v32  ;;  %1118 = vadd.xlane.f32.xlu1 %v1117_v33 }
 0xaf4   :  { %v1234_v34 = vpop.permute.xlu2 %1233 }
 0xaf5   :  { %1246 = vmatpush.bf16.msrb.mxu2 %v1234_v34  ;;  %v1288_v35 = vpop.permute.xlu0 %1287 }
 0xaf6   :  { %1300 = vmatpush.bf16.msrb.mxu1 %v1288_v35  ;;  %v1791_v35 = vld [vmem:[%s2823_s14 + $0x38] sm:$0xff] }
 0xaf7   :  { %v1922_v49 = vpop.eup %1921  ;;  %1488 = vmatpush.bf16.msra.mxu0 %v1791_v35 }
 0xaf8   :  { %v1286_v37 = vpack.c.bf16 %v1922_v49, %v1922_v49  ;;  %1704 = vmatmul.msk.bf16.vlgmr.msrb.gmra.mxu2 %vm448_vm9, %v1232_v36  ;;  %v1282_v38 = vsel %vm1110_vm12, %v1922_v49, 0.0  ;;  %v1790_v36 = vld [vmem:[%s2823_s14 + $0x30] sm:$0xff]  ;;  %v1789_v49 = vld [vmem:[%s2823_s14 + $0x28] sm:$0xff] }
 0xaf9   :  { %1283 = vadd.xlane.f32.xlu2 %v1282_v38  ;;  %1437 = vmatpush.bf16.msra.mxu2 %v1787_v17  ;;  %v1859_v38 = vld [vmem:[#allocation17 + $0x1] ss:$0 sm:$0xff] }
 0xafa   :  { %1706 = vmatmul.msk.bf16.vlgmr.msrb.gmra.mxu1 %vm448_vm9, %v1286_v37  ;;  %v1788_v37 = vld [vmem:[%s2823_s14 + $0x20] sm:$0xff] }
 0xafb   :  { %1489 = vmatpush.bf16.msra.mxu0 %v1790_v36 }
 0xafd   :  { %v1137_v39 = vpop.f32.mrf.mxu2 }
 0xaff   :  { %1490 = vmatpush.bf16.msra.mxu0 %v1789_v49 }
 0xb03   :  { %1491 = vmatpush.bf16.msra.mxu0 %v1788_v37 }
 0xb05   :  { %v1139_v50 = vpop.f32.mrf.mxu2 }
 0xb5c   :  { %v1176_v40 = vpop.xlane.xlu1 %1175 }
 0xb5d   :  { %1923 = vrcp.f32 %v1176_v40 }
 0xb62   :  { %v1230_v46 = vpop.xlane.xlu0 %1229 }
 0xb63   :  { %v1924_v41 = vpop.eup %1923 }
 0xb64   :  { %v1119_v59 = vpop.xlane.xlu1 %1118 }
 0xb67   :  { %v1194_v42 = vpop.f32.mrf.mxu1 }
 0xb68   :  { %v1198_v43 = vmul.f32 %v1924_v41, %v1194_v42 }
 0xb6a   :  { %1308 = vrot.lane.b32.xlu1 %v1198_v43, %s2343_s25 }
 0xb6c   :  { %v1284_v44 = vpop.xlane.xlu2 %1283 }
 0xb6d   :  { %1925 = vrcp.f32 %v1284_v44 }
 0xb6e   :  { %1927 = vrcp.f32 %v1230_v46 }
 0xb6f   :  { %v1196_v45 = vpop.f32.mrf.mxu1  ;;  %1929 = vrcp.f32 %v1119_v59 }
 0xb73   :  { %v1926_v47 = vpop.eup %1925 }
 0xb74   :  { %v1928_v52 = vpop.eup %1927 }
 0xb75   :  { %v1930_v60 = vpop.eup %1929 }
 0xb76   :  { %v1141_v62 = vmul.f32 %v1930_v60, %v1137_v39 }
 0xb77   :  { %v1302_v48 = vpop.f32.mrf.mxu1 }
 0xb78   :  { %v1306_v51 = vmul.f32 %v1926_v47, %v1302_v48 }
 0xb7a   :  { %1316 = vrot.lane.b32.xlu0 %v1306_v51, %s2373_s1 }
 0xb7b   :  { %v1248_v53 = vpop.f32.mrf.mxu2 }
 0xb7c   :  { %v1252_v54 = vmul.f32 %v1928_v52, %v1248_v53  ;;  %v1860_v53 = vld [vmem:[#allocation19 + $0x1] ss:$0 sm:$0xff] }
 0xb7e   :  { %1312 = vrot.lane.b32.xlu2 %v1252_v54, %s2346_s22 }
 0xb7f   :  { %v1304_v55 = vpop.f32.mrf.mxu1 }
 0xb83   :  { %v1250_v56 = vpop.f32.mrf.mxu2 }
 0xbd8   :  { %v1313_v0 = vpop.permute.xlu2 %1312 }
 0xbdc   :  { %v1309_v61 = vpop.permute.xlu1 %1308 }
 0xbdd   :  { %v1319_v63 = vsel %vm427_vm8, %v1141_v62, %v1309_v61 }
 0xbde   :  { %v1320_v2 = vsel %vm448_vm9, %v1319_v63, %v1313_v0  ;;  %v1793_v0 = vld [vmem:[%s2827_s18 + $0x8] sm:$0xff] }
 0xbdf   :  { %1558 = vmatpush.bf16.msra.mxu1 %v1793_v0 }
 0xbec   :  { %v1317_v1 = vpop.permute.xlu0 %1316 }
 0xbed   :  { %v1321_v3 = vsel %vm721_vm10, %v1320_v2, %v1317_v1  ;;  %v1792_v1 = vld [vmem:[%s2827_s18] sm:$0xff] }
 0xbee   :  { %v1322_v4 = vpack.c.bf16 %v1321_v3, %v1321_v3  ;;  %1559 = vmatpush.bf16.msra.mxu1 %v1792_v1 }
 0xbf0   :  { %1715 = vmatmul.msk.bf16.vlgmr.msrb.gmra.mxu3 %vm302_vm0, %v1322_v4 }
 0xc73   :  { %v1350_v6 = vpop.f32.mrf.mxu3 }
 0xc74   :  { %v1351_v7 = vadd.f32 %v1856_v5, %v1350_v6 }
 0xc76   :  { %v1354_v8 = vadd.f32 %v1351_v7, %v2707_v31  ;;  %v1786_v31 = vld [vmem:[%s2821_s12 + $0x10] sm:$0xff] }
 0xc77   :  { %1438 = vmatpush.bf16.msra.mxu2 %v1786_v31 }
 0xc78   :  { %v1360_v9 = vsel %vm1359_vm13, %v1354_v8, 0.0 }
 0xc79   :  { %1361 = vadd.xlane.f32.xlu0 %v1360_v9 }
 0xc7b   :  { %v1352_v11 = vpop.f32.mrf.mxu3 }
 0xcec   :  { %v1362_v12 = vpop.xlane.xlu0 %1361 }
 0xced   :  { %v1363_v13 = vmul.f32 %v1362_v12, %v2569_v10  ;;  %v1861_v12 = vld [vmem:[#allocation20 + $0x1] ss:$0 sm:$0xff] }
 0xcef   :  { %v1364_v14 = vsub.f32 %v1354_v8, %v1363_v13 }
 0xcf1   :  { %v1365_v15 = vmul.f32 %v1364_v14, %v1364_v14 }
 0xcf3   :  { %v1366_v16 = vsel %vm1359_vm13, %v1365_v15, 0.0  ;;  %v1862_v15 = vld [vmem:[#allocation22 + $0x1] ss:$0 sm:$0xff] }
 0xcf4   :  { %1367 = vadd.xlane.f32.xlu1 %v1366_v16 }
 0xd67   :  { %v1368_v18 = vpop.xlane.xlu1 %1367 }
 0xd68   :  { %v1369_v19 = vmul.f32 %v1368_v18, %v2569_v10  ;;  %v1794_v18 = vld [vmem:[#allocation25] sm:$0xff] }
 0xd6a   :  { %v1370_v20 = vadd.f32 1e-05, %v1369_v19  ;;  %v1863_v19 = vld [vmem:[#allocation23] ss:$0 sm:$0xff] }
 0xd6c   :  { %1931 = vrsqrt.f32 %v1370_v20  ;;  %vm1377_vm9 = vweird.f32 %v1370_v20 }
 0xd72   :  { %v1932_v21 = vpop.eup %1931 }
 0xd73   :  { %v1372_v22 = vmul.f32 %v1932_v21, %v1370_v20  ;;  %vm1378_vm8 = vweird.f32 %v1932_v21 }
 0xd74   :  { %vm1379_vm10 = vmor %vm1377_vm9, %vm1378_vm8 }
 0xd75   :  { %v1373_v23 = vmul.f32 %v1932_v21, %v1372_v22 }
 0xd77   :  { %v1374_v24 = vmul.f32 0.5, %v1373_v23 }
 0xd79   :  { %v1375_v25 = vsub.f32 1.5, %v1374_v24 }
 0xd7b   :  { %v1376_v26 = vmul.f32 %v1932_v21, %v1375_v25  ;;  %v1864_v25 = vld [vmem:[%s2849_s3] ss:$0 sm:$0xff] }
 0xd7d   :  { %v1380_v28 = vsel %vm1379_vm10, %v1932_v21, %v1376_v26 }
 0xd7e   :  { %v1381_v30 = vmul.f32 %v1380_v28, %v1364_v14 }
 0xd80   :  { %v1385_v32 = vmul.f32 %v1857_v27, %v1381_v30 }
 0xd82   :  { %v1389_v33 = vadd.f32 %v1858_v29, %v1385_v32 }
 0xd84   :  { %v1412_v34 = vpack.c.bf16 %v1389_v33, %v1389_v33 }
 0xd86   :  { %1736 = vmatmul.msk.bf16.vlgmr.msra.gmra.mxu2 %vm302_vm0, %v1412_v34 }
 0xe09   :  { %v1440_v39 = vpop.f32.mrf.mxu2 }
 0xe0a   :  { %v1441_v50 = vadd.f32 %v1859_v38, %v1440_v39 }
 0xe0c   :  { %v1445_v40 = vmul.f32 0.044715, %v1441_v50  ;;  %v1444_v47 = vmul.f32 0.5, %v1441_v50 }
 0xe0e   :  { %v1446_v41 = vmul.f32 %v1445_v40, %v1441_v50 }
 0xe10   :  { %v1447_v42 = vmul.f32 %v1446_v41, %v1441_v50 }
 0xe11   :  { %v1442_v43 = vpop.f32.mrf.mxu2 }
 0xe12   :  { %v1448_v44 = vadd.f32 %v1447_v42, %v1441_v50 }
 0xe14   :  { %v1449_v45 = vmul.f32 0.7978846, %v1448_v44 }
 0xe16   :  { %1933 = vtanh.f32 %v1449_v45 }
 0xe1c   :  { %v1934_v46 = vpop.eup %1933 }
 0xe1d   :  { %v1451_v48 = vadd.f32 1.0, %v1934_v46 }
 0xe1f   :  { %v1452_v51 = vmul.f32 %v1451_v48, %v1444_v47 }
 0xe21   :  { %v1453_v52 = vpack.c.bf16 %v1452_v51, %v1452_v51 }
 0xe23   :  { %1753 = vmatmul.msk.bf16.vlgmr.msra.gmra.mxu0 %vm910_vm2, %v1453_v52 }
 0xea0   :  { %v1493_v54 = vpop.f32.mrf.mxu0 }
 0xea1   :  { %v1494_v55 = vadd.f32 %v1860_v53, %v1493_v54 }
 0xea3   :  { %v1497_v56 = vadd.f32 %v1494_v55, %v1389_v33 }
 0xea5   :  { %v1498_v57 = vsel %vm1359_vm13, %v1497_v56, 0.0 }
 0xea6   :  { %1499 = vadd.xlane.f32.xlu2 %v1498_v57 }
 0xea8   :  { %v1495_v58 = vpop.f32.mrf.mxu0 }
 0xf19   :  { %v1500_v59 = vpop.xlane.xlu2 %1499 }
 0xf1a   :  { %v1501_v60 = vmul.f32 %v1500_v59, %v2569_v10 }
 0xf1c   :  { %v1502_v61 = vsub.f32 %v1497_v56, %v1501_v60 }
 0xf1e   :  { %v1503_v62 = vmul.f32 %v1502_v61, %v1502_v61 }
 0xf20   :  { %v1504_v63 = vsel %vm1359_vm13, %v1503_v62, 0.0 }
 0xf21   :  { %1505 = vadd.xlane.f32.xlu0 %v1504_v63 }
 0xf94   :  { %v1506_v2 = vpop.xlane.xlu0 %1505 }
 0xf95   :  { %v1507_v3 = vmul.f32 %v1506_v2, %v2569_v10  ;;  %v1795_v10 = vld [vmem:[#allocation25 + $0x8] sm:$0xff] }
 0xf96   :  { %1596 = vmatpush.bf16.msra.mxu3 %v1795_v10 }
 0xf97   :  { %v1508_v4 = vadd.f32 1e-05, %v1507_v3 }
 0xf99   :  { %1935 = vrsqrt.f32 %v1508_v4  ;;  %vm1515_vm15 = vweird.f32 %v1508_v4 }
 0xf9a   :  { %1597 = vmatpush.bf16.msra.mxu3 %v1794_v18 }
 0xf9f   :  { %v1936_v5 = vpop.eup %1935 }
 0xfa0   :  { %v1510_v6 = vmul.f32 %v1936_v5, %v1508_v4  ;;  %vm1516_vm14 = vweird.f32 %v1936_v5 }
 0xfa1   :  { %vm1517_vm1 = vmor %vm1515_vm15, %vm1516_vm14 }
 0xfa2   :  { %v1511_v7 = vmul.f32 %v1936_v5, %v1510_v6 }
 0xfa4   :  { %v1512_v8 = vmul.f32 0.5, %v1511_v7 }
 0xfa6   :  { %v1513_v9 = vsub.f32 1.5, %v1512_v8 }
 0xfa8   :  { %v1514_v11 = vmul.f32 %v1936_v5, %v1513_v9 }
 0xfaa   :  { %v1518_v13 = vsel %vm1517_vm1, %v1936_v5, %v1514_v11 }
 0xfab   :  { %v1519_v14 = vmul.f32 %v1518_v13, %v1502_v61 }
 0xfad   :  { %v1523_v16 = vmul.f32 %v1861_v12, %v1519_v14 }
 0xfaf   :  { %v1527_v17 = vadd.f32 %v1862_v15, %v1523_v16 }
 0xfb1   :  { %v1532_v31 = vpack.c.bf16 %v1527_v17, %v1527_v17 }
 0xfb3   :  { %1762 = vmatmul.msk.bf16.vlgmr.msra.gmra.mxu1 %vm302_vm0, %v1532_v31 }
0x1030   :  { %v1561_v20 = vpop.f32.mrf.mxu1 }
0x1031   :  { %v1562_v21 = vadd.f32 %v1863_v19, %v1561_v20 }
0x1033   :  { %1937 = vtanh.f32 %v1562_v21 }
0x1038   :  { %v1563_v22 = vpop.f32.mrf.mxu1 }
0x1039   :  { %v1938_v23 = vpop.eup %1937 }
0x103a   :  { %v1570_v24 = vpack.c.bf16 %v1938_v23, %v1938_v23 }
0x103c   :  { %1771 = vmatmul.msk.bf16.vlgmr.msra.gmra.mxu3 %vm302_vm0, %v1570_v24 }
0x10bf   :  { %v1599_v26 = vpop.f32.mrf.mxu3 }
0x10c0   :  { %v1600_v27 = vadd.f32 %v1864_v25, %v1599_v26 }
0x10c2   :  { %1603 = vst [vmem:[#allocation26] sm:$0x3] %v1600_v27 }
0x10c3   :  { %1614 = dma.vmem_to_hbm [thread:$0]  %s1610_s23, 32, %s1612_s30, [#allocation4]  }
0x10c7   :  { %v1601_v28 = vpop.f32.mrf.mxu3 }
0x10c8   :  { %2339 = dma.done.wait [#allocation4], 32  }
0x10c9   :  { %2340 = vsyncadd [#allocation4], 4294967264 }
0x10ca   :  { %1619 = vsyncpa [#allocation3], 1 }
0x10cb   :  { %1620 = vsyncpa [#allocation6], 1 }
0x10cc   :  { %1621 = vsyncpa [#allocation9], 1 }
0x10cd   :  { %1622 = vsyncpa [#allocation12], 1 }
0x10ce   :  { %1623 = vsyncpa [#allocation15], 1 }
0x10cf   :  { %1624 = vsyncpa [#allocation18], 1 }
0x10d0   :  { %1625 = vsyncpa [#allocation21], 1 }
0x10d1   :  { %1626 = vsyncpa [#allocation24], 1 }
0x10d2   :  { %1627 = vsyncpa [#allocation4], 1 }

</bundles_post_ra>
